<compile_context>
chip_gen: v7x
topology: tpu7x:2x2x1
jax: 0.10.0
libtpu: 0.0.40
codegen_flags: <defaults>
</compile_context>

<pallas_src>
import jax
import jax.numpy as jnp
from jax.experimental import pallas as pl
from jax.experimental.pallas import tpu as pltpu


def _pick_time_block(T, max_block):
    """Largest tb <= max_block with T % tb == 0 and (tb % 8 == 0 or tb == T).

    The second-minor block-dim rule needs tb to be a multiple of 8 (or the full
    extent). Falls back to one block over all T for awkward (e.g. prime) T.
    """
    if T <= max_block:
        return T
    for d in range(max_block, 7, -1):
        if d % 8 == 0 and T % d == 0:
            return d
    return T


# ---------------------------------------------------------------------------
# Pass 1: hoisted input projection, written time-major
# ---------------------------------------------------------------------------
def input_projection_kernel(x_ref, w_ref, b_ref, o_ref):
    # x_ref: (B, tt, E) f32 ; w_ref: (E, 4H) bf16 (i/f/o cols pre-scaled by 0.5)
    # b_ref: (1, 4H) f32    ; o_ref: (tt, B, 4H) f32  -- gx, time-major
    B, tt, E = x_ref.shape
    G = w_ref.shape[1]
    # Gather the tt timestep slabs in time-major row order (static strided ref loads +
    # bf16 cast) and run ONE (B*tt, E) x (E, 4H) MXU matmul per grid step, so the
    # W_ih^T RHS streams through the MXU once per block instead of once per timestep.
    x_tmaj = jnp.concatenate(
        [x_ref[:, t, :].astype(jnp.bfloat16) for t in range(tt)], axis=0)
    y = (jnp.dot(x_tmaj, w_ref[...], preferred_element_type=jnp.float32)
         + b_ref[...])                                    # (tt*B, 4H) f32
    o_ref[...] = y.reshape(tt, B, G)                      # layout-clean split (B rows)


# ---------------------------------------------------------------------------
# Pass 2: sequential LSTM recurrence (+ hoisted fc_out + sigmoid)
# ---------------------------------------------------------------------------
def lstm_recurrence_kernel(gx_ref, whh_ref, fcw_ref, fcb_ref,
                           out_ref, h_ref, c_ref, hs_ref):
    # gx_ref : (tb, B, 4H) f32   x@W_ih^T + (b_ih+b_hh); i/f/o lanes pre-scaled by 0.5
    # whh_ref: (H, 4H)     bf16  W_hh^T, i/f/o columns pre-scaled by 0.5
    # fcw_ref: (1, H)      f32   fc_out weight
    # fcb_ref: (1,)        f32   fc_out bias (SMEM scalar)
    # out_ref: (tb, B)     f32   sigmoid(fc_out(h_t)) for this time block
    # h_ref/c_ref: (B, H)  f32   state carried across grid steps (VMEM scratch)
    # hs_ref : (tb, B, H)  f32   per-timestep hidden states (fc hoisted out of loop)
    @pl.when(pl.program_id(0) == 0)
    def _init():
        h_ref[...] = jnp.zeros_like(h_ref)
        c_ref[...] = jnp.zeros_like(c_ref)

    tb = gx_ref.shape[0]
    B, H = h_ref.shape
    whh = whh_ref[...]                                     # (H, 4H) bf16, hoisted

    # sigmoid(x) = 0.5*tanh(0.5*x) + 0.5 : the 0.5 pre-scale is already folded into the
    # i/f/o weights/bias, so the loop needs only one full-vreg tanh plus this affine
    # fixup (built ONCE, outside the unrolled loop; g lanes pass through unchanged).
    # PyTorch LSTMCell gate order along 4H is i, f, g, o.
    lane = jax.lax.broadcasted_iota(jnp.int32, (B, 4 * H), 1)
    is_g = jnp.logical_and(lane >= 2 * H, lane < 3 * H)
    post_scale = jnp.where(is_g, jnp.float32(1.0), jnp.float32(0.5))
    post_offset = jnp.where(is_g, jnp.float32(0.0), jnp.float32(0.5))

    # TODO(synk): hold W_hh resident in the MXU weight registers across the unrolled
    # loop (pltpu.matmul_push_rhs / matmul_acc_lhs / matmul_pop) to drop the per-step
    # RHS push from the serial chain.
    def step(s, carry):
        h, c = carry
        gates = gx_ref[s] + jnp.dot(h.astype(jnp.bfloat16), whh,
                                    preferred_element_type=jnp.float32)
        act = jnp.tanh(gates) * post_scale + post_offset   # one EUP pass, all 4 gates
        i_a = act[:, 0 * H:1 * H]
        f_a = act[:, 1 * H:2 * H]
        g_a = act[:, 2 * H:3 * H]
        o_a = act[:, 3 * H:4 * H]
        c_new = f_a * c + i_a * g_a
        h_new = o_a * jnp.tanh(c_new)
        hs_ref[s] = h_new          # parked for the hoisted fc; not on the serial chain
        return h_new, c_new

    unroll = max(u for u in (8, 4, 2, 1) if tb % u == 0)
    h_fin, c_fin = jax.lax.fori_loop(0, tb, step, (h_ref[...], c_ref[...]),
                                     unroll=unroll)
    h_ref[...] = h_fin
    c_ref[...] = c_fin

    # Hoisted fc_out + sigmoid: ONE cross-lane reduction + ONE sigmoid per time block
    # (fc never feeds back into h/c, so it does not belong on the recurrence chain).
    fcw = fcw_ref[...].reshape(1, 1, H)
    logits = jnp.sum(hs_ref[...] * fcw, axis=-1) + fcb_ref[0]      # (tb, B)
    out_ref[...] = jax.nn.sigmoid(logits)


def rnn_decoder_forward(inp_emb, params, *, time_block=32):
    """inp_emb: (B, T*E) float32.  Returns (B, T) float32 == torch RNNDecoder.forward."""
    E = params['embed_size']
    H = params['hidden_size']
    B = inp_emb.shape[0]
    assert inp_emb.shape[1] % E == 0, "inp_emb width must be a multiple of embed_size"
    T = inp_emb.shape[1] // E
    G = 4 * H

    # Fold the 0.5 sigmoid pre-scale into the i/f/o gate weights and bias on the host
    # (exact power-of-two scaling, applied before the bf16 cast).  Gate order: i,f,g,o.
    col_scale = jnp.concatenate([
        jnp.full((2 * H,), 0.5, jnp.float32),
        jnp.ones((H,), jnp.float32),
        jnp.full((H,), 0.5, jnp.float32)])
    wih_t = (params['w_ih'].T * col_scale).astype(jnp.bfloat16)             # (E, 4H)
    whh_t = (params['w_hh'].T * col_scale).astype(jnp.bfloat16)             # (H, 4H)
    bias = ((params['b_ih'] + params['b_hh']) * col_scale
            ).reshape(1, G).astype(jnp.float32)

    # ---- pass 1: gx = x @ W_ih^T + bias, written directly in (T, B, 4H) layout ----
    x3 = inp_emb.reshape(B, T, E)        # free view; read f32, cast to bf16 in-kernel
    tt = _pick_time_block(T, 16)         # >=2 parallel grid steps once T >= 32 (v7x)
    gx = pl.pallas_call(
        input_projection_kernel,
        out_shape=jax.ShapeDtypeStruct((T, B, G), jnp.float32),
        grid_spec=pltpu.PrefetchScalarGridSpec(
            num_scalar_prefetch=0,
            grid=(T // tt,),
            in_specs=[
                pl.BlockSpec((B, tt, E), lambda g: (0, g, 0)),   # x time block
                pl.BlockSpec((E, G), lambda g: (0, 0)),          # W_ih^T (resident)
                pl.BlockSpec((1, G), lambda g: (0, 0)),          # bias
            ],
            out_specs=pl.BlockSpec((tt, B, G), lambda g: (g, 0, 0)),
        ),
        compiler_params=pltpu.CompilerParams(
            dimension_semantics=("parallel",)),
    )(x3, wih_t, bias)

    # ---- pass 2: sequential recurrence, tb timesteps per grid invocation ----
    tb = _pick_time_block(T, time_block)
    fc_w = params['fc_w'].reshape(1, H).astype(jnp.float32)
    fc_b = params['fc_b'].reshape(1).astype(jnp.float32)

    # NOTE(v7x): to feed the second TensorCore at large batch, prepend a "parallel"
    # batch grid axis, block the h/c/hs scratch per batch block, and re-gate the init
    # pl.when on the TIME axis program_id (no longer axis 0).  No-op at B=8 / v5e/v6e.
    out_tb = pl.pallas_call(
        lstm_recurrence_kernel,
        out_shape=jax.ShapeDtypeStruct((T, B), jnp.float32),
        grid_spec=pltpu.PrefetchScalarGridSpec(
            num_scalar_prefetch=0,
            grid=(T // tb,),
            in_specs=[
                pl.BlockSpec((tb, B, G), lambda g: (g, 0, 0)),       # gx time block
                pl.BlockSpec((H, G), lambda g: (0, 0)),              # W_hh^T (bf16)
                pl.BlockSpec((1, H), lambda g: (0, 0)),              # fc weight
                pl.BlockSpec(memory_space=pltpu.MemorySpace.SMEM),   # fc bias scalar
            ],
            out_specs=pl.BlockSpec((tb, B), lambda g: (g, 0)),
            scratch_shapes=[
                pltpu.VMEM((B, H), jnp.float32),                 # hidden carry
                pltpu.VMEM((B, H), jnp.float32),                 # cell carry
                pltpu.VMEM((tb, B, H), jnp.float32),             # h_t park (hoisted fc)
            ],
        ),
        compiler_params=pltpu.CompilerParams(
            dimension_semantics=("arbitrary",)),
    )(gx, whh_t, fc_w, fc_b)

    return out_tb.T       # (B, T); tiny (T*B*4 B) epilogue transpose


# ---------------------------------------------------------------------------
# Pure-JAX reference of the torch forward (for validation)
# ---------------------------------------------------------------------------
def rnn_decoder_reference(inp_emb, params):
    E, H = params['embed_size'], params['hidden_size']
    B = inp_emb.shape[0]
    T = inp_emb.shape[1] // E
    x = inp_emb.reshape(B, T, E).transpose(1, 0, 2)   # (T, B, E)

    def step(carry, x_t):
        h, c = carry
        gates = x_t @ params['w_ih'].T + h @ params['w_hh'].T \
            + params['b_ih'] + params['b_hh']
        i = jax.nn.sigmoid(gates[:, 0 * H:1 * H])
        f = jax.nn.sigmoid(gates[:, 1 * H:2 * H])
        g = jnp.tanh(gates[:, 2 * H:3 * H])
        o = jax.nn.sigmoid(gates[:, 3 * H:4 * H])
        c = f * c + i * g
        h = o * jnp.tanh(c)
        out = jax.nn.sigmoid(h @ params['fc_w'].T + params['fc_b'])   # (B, 1)
        return (h, c), out[:, 0]

    init = (jnp.zeros((B, H), jnp.float32), jnp.zeros((B, H), jnp.float32))
    _, outs = jax.lax.scan(step, init, x)
    return outs.T                                     # (B, T)


def init_params(key, embed_size, hidden_size):
    """Deterministic PyTorch-style init: uniform(-1/sqrt(H), 1/sqrt(H))."""
    k = 1.0 / jnp.sqrt(jnp.float32(hidden_size))
    ks = jax.random.split(key, 6)
    u = lambda kk, shape: jax.random.uniform(kk, shape, jnp.float32, -k, k)
    return {
        'embed_size': embed_size,
        'hidden_size': hidden_size,
        'w_ih': u(ks[0], (4 * hidden_size, embed_size)),
        'w_hh': u(ks[1], (4 * hidden_size, hidden_size)),
        'b_ih': u(ks[2], (4 * hidden_size,)),
        'b_hh': u(ks[3], (4 * hidden_size,)),
        'fc_w': u(ks[4], (1, hidden_size)),
        'fc_b': u(ks[5], (1,)),
    }


if __name__ == "__main__":
    # The torch forward hardcodes 512-wide slices, so embed_size must be 512 for the
    # module to be self-consistent; batch / hidden / window_count stay small.
    EMBED_SIZE = 512
    HIDDEN_SIZE = 32
    BATCH = 8
    WINDOWS = 8

    key = jax.random.PRNGKey(0)
    k_param, k_inp = jax.random.split(key)
    params = init_params(k_param, EMBED_SIZE, HIDDEN_SIZE)
    inp_emb = jax.random.normal(k_inp, (BATCH, WINDOWS * EMBED_SIZE), jnp.float32)

    out = jax.block_until_ready(rnn_decoder_forward(inp_emb, params))
    ref = jax.block_until_ready(rnn_decoder_reference(inp_emb, params))

    assert out.shape == (BATCH, WINDOWS), out.shape
    max_diff = float(jnp.max(jnp.abs(out - ref)))
    # Both matmuls (input projection and the recurrent h@W_hh) run the MXU with bf16
    # operands (f32 accumulation); measured error is ~3e-3 on sigmoid outputs at T=8.
    assert max_diff < 2e-2, f"max abs diff {max_diff}"
    print("KERNEL_OK")
</pallas_src>

<mosaic_0001>
module attributes {stable_mosaic.version = 11 : i64} {
  func.func @input_projection_kernel(%arg0: i32, %arg1: memref<8x8x512xf32, #tpu.memory_space<vmem>>, %arg2: memref<512x128xbf16, #tpu.memory_space<vmem>>, %arg3: memref<1x128xf32, #tpu.memory_space<vmem>>, %arg4: memref<8x8x128xf32, #tpu.memory_space<vmem>>) attributes {dimension_semantics = [#tpu.dimension_semantics<parallel>], iteration_bounds = array<i64: 1>, scalar_prefetch = 0 : i64, scratch_operands = 0 : i64, tpu.core_type = #tpu.core_type<tc>, window_params = [{transform_indices = @transform_0, window_bounds = array<i64: 8, 8, 512>}, {pipeline_mode = #tpu.pipeline_mode<synchronous>, transform_indices = @transform_1, window_bounds = array<i64: 512, 128>}, {pipeline_mode = #tpu.pipeline_mode<synchronous>, transform_indices = @transform_2, window_bounds = array<i64: 1, 128>}, {transform_indices = @transform_3, window_bounds = array<i64: 8, 8, 128>}]} {
    %c0 = arith.constant 0 : index
    %c0_0 = arith.constant 0 : index
    %c0_1 = arith.constant 0 : index
    %0 = vector.load %arg1[%c0, %c0_0, %c0_1] : memref<8x8x512xf32, #tpu.memory_space<vmem>>, vector<8x1x512xf32>
    %1 = vector.shape_cast %0 : vector<8x1x512xf32> to vector<8x512xf32>
    %2 = arith.truncf %1 : vector<8x512xf32> to vector<8x512xbf16>
    %c0_2 = arith.constant 0 : index
    %c1 = arith.constant 1 : index
    %c0_3 = arith.constant 0 : index
    %3 = vector.load %arg1[%c0_2, %c1, %c0_3] : memref<8x8x512xf32, #tpu.memory_space<vmem>>, vector<8x1x512xf32>
    %4 = vector.shape_cast %3 : vector<8x1x512xf32> to vector<8x512xf32>
    %5 = arith.truncf %4 : vector<8x512xf32> to vector<8x512xbf16>
    %c0_4 = arith.constant 0 : index
    %c2 = arith.constant 2 : index
    %c0_5 = arith.constant 0 : index
    %6 = vector.load %arg1[%c0_4, %c2, %c0_5] : memref<8x8x512xf32, #tpu.memory_space<vmem>>, vector<8x1x512xf32>
    %7 = vector.shape_cast %6 : vector<8x1x512xf32> to vector<8x512xf32>
    %8 = arith.truncf %7 : vector<8x512xf32> to vector<8x512xbf16>
    %c0_6 = arith.constant 0 : index
    %c3 = arith.constant 3 : index
    %c0_7 = arith.constant 0 : index
    %9 = vector.load %arg1[%c0_6, %c3, %c0_7] : memref<8x8x512xf32, #tpu.memory_space<vmem>>, vector<8x1x512xf32>
    %10 = vector.shape_cast %9 : vector<8x1x512xf32> to vector<8x512xf32>
    %11 = arith.truncf %10 : vector<8x512xf32> to vector<8x512xbf16>
    %c0_8 = arith.constant 0 : index
    %c4 = arith.constant 4 : index
    %c0_9 = arith.constant 0 : index
    %12 = vector.load %arg1[%c0_8, %c4, %c0_9] : memref<8x8x512xf32, #tpu.memory_space<vmem>>, vector<8x1x512xf32>
    %13 = vector.shape_cast %12 : vector<8x1x512xf32> to vector<8x512xf32>
    %14 = arith.truncf %13 : vector<8x512xf32> to vector<8x512xbf16>
    %c0_10 = arith.constant 0 : index
    %c5 = arith.constant 5 : index
    %c0_11 = arith.constant 0 : index
    %15 = vector.load %arg1[%c0_10, %c5, %c0_11] : memref<8x8x512xf32, #tpu.memory_space<vmem>>, vector<8x1x512xf32>
    %16 = vector.shape_cast %15 : vector<8x1x512xf32> to vector<8x512xf32>
    %17 = arith.truncf %16 : vector<8x512xf32> to vector<8x512xbf16>
    %c0_12 = arith.constant 0 : index
    %c6 = arith.constant 6 : index
    %c0_13 = arith.constant 0 : index
    %18 = vector.load %arg1[%c0_12, %c6, %c0_13] : memref<8x8x512xf32, #tpu.memory_space<vmem>>, vector<8x1x512xf32>
    %19 = vector.shape_cast %18 : vector<8x1x512xf32> to vector<8x512xf32>
    %20 = arith.truncf %19 : vector<8x512xf32> to vector<8x512xbf16>
    %c0_14 = arith.constant 0 : index
    %c7 = arith.constant 7 : index
    %c0_15 = arith.constant 0 : index
    %21 = vector.load %arg1[%c0_14, %c7, %c0_15] : memref<8x8x512xf32, #tpu.memory_space<vmem>>, vector<8x1x512xf32>
    %22 = vector.shape_cast %21 : vector<8x1x512xf32> to vector<8x512xf32>
    %23 = arith.truncf %22 : vector<8x512xf32> to vector<8x512xbf16>
    %24 = tpu.concatenate %2, %5, %8, %11, %14, %17, %20, %23 in 0 : vector<8x512xbf16>, vector<8x512xbf16>, vector<8x512xbf16>, vector<8x512xbf16>, vector<8x512xbf16>, vector<8x512xbf16>, vector<8x512xbf16>, vector<8x512xbf16> -> vector<64x512xbf16>
    %c0_16 = arith.constant 0 : index
    %c0_17 = arith.constant 0 : index
    %25 = vector.load %arg2[%c0_16, %c0_17] : memref<512x128xbf16, #tpu.memory_space<vmem>>, vector<512x128xbf16>
    %cst = arith.constant dense<0.000000e+00> : vector<64x128xf32>
    %26 = tpu.matmul %24, %25, %cst {dimension_numbers = #tpu.dot_dimension_numbers<[1], [0], [0], [1], [0, 0, 1, 1], [], []>} : vector<64x512xbf16>, vector<512x128xbf16>, vector<64x128xf32> -> vector<64x128xf32>
    %c0_18 = arith.constant 0 : index
    %c0_19 = arith.constant 0 : index
    %27 = vector.load %arg3[%c0_18, %c0_19] : memref<1x128xf32, #tpu.memory_space<vmem>>, vector<1x128xf32>
    %28 = vector.broadcast %27 : vector<1x128xf32> to vector<64x128xf32>
    %29 = arith.addf %26, %28 : vector<64x128xf32>
    %30 = vector.shape_cast %29 : vector<64x128xf32> to vector<8x8x128xf32>
    %c0_20 = arith.constant 0 : index
    %c0_21 = arith.constant 0 : index
    %c0_22 = arith.constant 0 : index
    %31 = vector.load %arg4[%c0_20, %c0_21, %c0_22] : memref<8x8x128xf32, #tpu.memory_space<vmem>>, vector<8x8x128xf32>
    tpu.vector_store %arg4[%c0_20, %c0_21, %c0_22], %30 {strides = array<i32>} : memref<8x8x128xf32, #tpu.memory_space<vmem>>, vector<8x8x128xf32>,
    return
  }
  func.func @transform_0(%arg0: i32) -> (i32, i32, i32) {
    %c0_i32 = arith.constant 0 : i32
    %c0_i32_0 = arith.constant 0 : i32
    %c0_i32_1 = arith.constant 0 : i32
    return %c0_i32, %arg0, %c0_i32_0 : i32, i32, i32
  }
  func.func @transform_1(%arg0: i32) -> (i32, i32) {
    %c0_i32 = arith.constant 0 : i32
    %c0_i32_0 = arith.constant 0 : i32
    %c0_i32_1 = arith.constant 0 : i32
    return %c0_i32, %c0_i32_0 : i32, i32
  }
  func.func @transform_2(%arg0: i32) -> (i32, i32) {
    %c0_i32 = arith.constant 0 : i32
    %c0_i32_0 = arith.constant 0 : i32
    %c0_i32_1 = arith.constant 0 : i32
    return %c0_i32, %c0_i32_0 : i32, i32
  }
  func.func @transform_3(%arg0: i32) -> (i32, i32, i32) {
    %c0_i32 = arith.constant 0 : i32
    %c0_i32_0 = arith.constant 0 : i32
    %c0_i32_1 = arith.constant 0 : i32
    return %arg0, %c0_i32, %c0_i32_0 : i32, i32, i32
  }
}

</mosaic_0001>

<bundles_post_ra>
// kernel: tpu_custom_call.1
= control target key start
LH: loop header
LB: loop body
LE: loop exit
PB: predicated region body
PF: predicated region fallthrough
CT: control target
= control target key end

     0   :  { %8 = vsyncpa [#allocation3], 0  ;;  %s4486_s0 = inlined_call_operand.hbm [shape: f32[8,8,512], index: 0, kind: input, shape index: {}]   ;;  %s4487_s1 = inlined_call_operand.hbm [shape: bf16[512,128], index: 1, kind: input, shape index: {}]   ;;  %s4488_s2 = inlined_call_operand.vmem [shape: f32[1,128], index: 2, kind: input, shape index: {}]   ;;  %s4489_s3 = inlined_call_operand.hbm [shape: f32[8,8,128], index: 3, kind: output, shape index: {}]  }
   0x1   :  { %9 = vsyncpa [#allocation6], 0 }
   0x2   :  { %10 = vsyncpa [#allocation4], 0  ;;  %s3480_s12 = smov [#allocation2]   ;;  %s3408_s16 = scalar_lea.hbm %s4486_s0, 4096 }
   0x3   :  { %s16_s13 = sshll.u32 %s3480_s12, 4  ;;  %p3409_p0 = scmp.ne.s32.totalorder %s4486_s0, %s3408_s16  ;;  %s17_s13 = int_to_ptr.vmem [resolvable:$true] %s16_s13 }
   0x4   :  { %p3412_p1 = scmp.lt.u32.totalorder %s3408_s16, %s4486_s0 }
   0x6   :  { %p3414_p2 = pnand %p3412_p1, %p3409_p0 }
   0x8   :  { %3417 = shalt.err (!%p3414_p2)
}
   0x9   :  { %s3418_s21 = scalar_lea.vmem %s17_s13, 4096  ;;  %p3423_p4 = scmp.lt.s32.totalorder %s17_s13, %s17_s13 }
   0xa   :  { %p3419_p3 = scmp.ne.s32.totalorder %s17_s13, %s3418_s21  ;;  %p3424_p5 = scmp.lt.s32.totalorder %s3418_s21, %s3418_s21 }
   0xc   :  { %p3425_p6 = por %p3424_p5, %p3423_p4 }
   0xe   :  { %p3426_p7 = pnand %p3425_p6, %p3419_p3 }
  0x10   :  { %3429 = shalt.err (!%p3426_p7)
}
  0x11   :  { %s3481_s22 = smov 512   ;;  %s3482_s23 = smov 32  }
  0x12   :  { %22 = dma.hbm_to_vmem [thread:$0]  %s4486_s0, 4096, %s17_s13, [#allocation3], %s3481_s22, %s3481_s22, %s3482_s23  }
  0x13   :  { %s3483_s26 = smov [#allocation5]   ;;  %s3430_s30 = scalar_lea.hbm %s4487_s1, 4096 }
  0x14   :  { %s28_s27 = sshll.u32 %s3483_s26, 4  ;;  %p3431_p8 = scmp.ne.s32.totalorder %s4487_s1, %s3430_s30  ;;  %s29_s27 = int_to_ptr.vmem [resolvable:$true] %s28_s27 }
  0x15   :  { %p3434_p9 = scmp.lt.u32.totalorder %s3430_s30, %s4487_s1 }
  0x17   :  { %p3436_p10 = pnand %p3434_p9, %p3431_p8 }
  0x19   :  { %3439 = shalt.err (!%p3436_p10)
}
  0x1a   :  { %s3440_s8 = scalar_lea.vmem %s29_s27, 4096  ;;  %p3445_p12 = scmp.lt.s32.totalorder %s29_s27, %s29_s27 }
  0x1b   :  { %p3441_p11 = scmp.ne.s32.totalorder %s29_s27, %s3440_s8  ;;  %p3446_p13 = scmp.lt.s32.totalorder %s3440_s8, %s3440_s8 }
  0x1d   :  { %p3447_p0 = por %p3446_p13, %p3445_p12 }
  0x1f   :  { %p3448_p1 = pnand %p3447_p0, %p3441_p11 }
  0x21   :  { %3451 = shalt.err (!%p3448_p1)
}
  0x22   :  { %s3484_s0 = smov 64   ;;  %s3485_s9 = smov 4  }
  0x23   :  { %34 = dma.hbm_to_vmem [thread:$0]  %s4487_s1, 4096, %s29_s27, [#allocation6], %s3484_s0, %s3484_s0, %s3485_s9  }
  0x24   :  { %3474 = dma.done.wait [#allocation3], 4096  }
  0x25   :  { %3475 = vsyncadd [#allocation3], 4294963200 }
  0x26   :  { %3476 = dma.done.wait [#allocation6], 4096  }
  0x27   :  { %3477 = vsyncadd [#allocation6], 4294963200  ;;  %v3376_v0 = vld [vmem:[#allocation5 + $0x40] sm:$0xff]   ;;  %v3380_v4 = vld [vmem:[#allocation5 + $0x48] sm:$0xff]   ;;  %v67_v21 = vlaneseq  ;;  %vm1836_vm0 = vcmask 1041409   ;;  %vm1839_vm1 = vcmask 1042434  }
  0x28   :  { %v3377_v1 = vld [vmem:[#allocation5 + $0xc0] sm:$0xff]   ;;  %3287 = vmatprep.subr.bf16.mxu0 %v3376_v0  ;;  %v3381_v5 = vld [vmem:[#allocation5 + $0xc8] sm:$0xff]   ;;  %v3384_v8 = vld [vmem:[#allocation5 + $0x50] sm:$0xff]   ;;  %vm1842_vm2 = vcmask 1043459   ;;  %vm1845_vm3 = vcmask 1044484   ;;  %vm1848_vm4 = vcmask 1045509  }
  0x29   :  { %v3378_v2 = vld [vmem:[#allocation5] sm:$0xff]   ;;  %3327 = vmatprep.subr.bf16.mxu1 %v3377_v1  ;;  %v3382_v6 = vld [vmem:[#allocation5 + $0x8] sm:$0xff]   ;;  %v3385_v9 = vld [vmem:[#allocation5 + $0xd0] sm:$0xff]   ;;  %v68_v26 = vshrl.u32 %v67_v21, 7  ;;  %vm1851_vm5 = vcmask 1046534   ;;  %vm1854_vm6 = vcmask 1047559  }
  0x2a   :  { %v3379_v3 = vld [vmem:[#allocation5 + $0x80] sm:$0xff]   ;;  %3288 = vmatpush3.bf16.msra.mxu0 %v3378_v2  ;;  %v3383_v7 = vld [vmem:[#allocation5 + $0x88] sm:$0xff]   ;;  %v3386_v10 = vld [vmem:[#allocation5 + $0x10] sm:$0xff]   ;;  %vm2770_vm7 = vcmask 1043456  }
  0x2b   :  { %3328 = vmatpush3.bf16.msra.mxu1 %v3379_v3  ;;  %3289 = vmatprep.subr.bf16.mxu0 %v3380_v4  ;;  %v3387_v11 = vld [vmem:[#allocation5 + $0x90] sm:$0xff]   ;;  %v3388_v12 = vld [vmem:[#allocation5 + $0x58] sm:$0xff]   ;;  %v3392_v16 = vld [vmem:[#allocation5 + $0x60] sm:$0xff]   ;;  %v3533_v31 = vsub.s32 1, %v68_v26  ;;  %v3535_v33 = vsub.s32 3, %v68_v26  ;;  %v3537_v35 = vsub.s32 0, %v68_v26 }
  0x2c   :  { %3329 = vmatprep.subr.bf16.mxu1 %v3381_v5  ;;  %v3389_v13 = vld [vmem:[#allocation5 + $0xd8] sm:$0xff]   ;;  %v3393_v17 = vld [vmem:[#allocation5 + $0xe0] sm:$0xff]   ;;  %v3396_v20 = vld [vmem:[#allocation5 + $0x68] sm:$0xff]   ;;  %v3539_v37 = vsub.s32 2, %v68_v26 }
  0x2d   :  { %v3390_v14 = vld [vmem:[#allocation5 + $0x18] sm:$0xff]   ;;  %v3394_v18 = vld [vmem:[#allocation5 + $0x20] sm:$0xff]   ;;  %v3397_v22 = vld [vmem:[#allocation5 + $0xe8] sm:$0xff]  }
  0x2e   :  { %3290 = vmatpush3.bf16.msra.mxu0 %v3382_v6  ;;  %v3391_v15 = vld [vmem:[#allocation5 + $0x98] sm:$0xff]   ;;  %v3395_v19 = vld [vmem:[#allocation5 + $0xa0] sm:$0xff]   ;;  %v3398_v23 = vld [vmem:[#allocation5 + $0x28] sm:$0xff]  }
  0x2f   :  { %3330 = vmatpush3.bf16.msra.mxu1 %v3383_v7  ;;  %3291 = vmatprep.subr.bf16.mxu0 %v3384_v8  ;;  %v3399_v24 = vld [vmem:[#allocation5 + $0xa8] sm:$0xff]   ;;  %v3400_v25 = vld [vmem:[#allocation5 + $0x70] sm:$0xff]   ;;  %v3404_v30 = vld [vmem:[#allocation5 + $0x78] sm:$0xff]  }
  0x30   :  { %3331 = vmatprep.subr.bf16.mxu1 %v3385_v9  ;;  %v3401_v27 = vld [vmem:[#allocation5 + $0xf0] sm:$0xff]   ;;  %v3405_v32 = vld [vmem:[#allocation5 + $0xf8] sm:$0xff]  }
  0x31   :  { %v3402_v28 = vld [vmem:[#allocation5 + $0x30] sm:$0xff]   ;;  %v3406_v34 = vld [vmem:[#allocation5 + $0x38] sm:$0xff]  }
  0x32   :  { %3292 = vmatpush3.bf16.msra.mxu0 %v3386_v10  ;;  %v3403_v29 = vld [vmem:[#allocation5 + $0xb0] sm:$0xff]   ;;  %v3407_v36 = vld [vmem:[#allocation5 + $0xb8] sm:$0xff]  }
  0x33   :  { %3332 = vmatpush3.bf16.msra.mxu1 %v3387_v11  ;;  %3293 = vmatprep.subr.bf16.mxu0 %v3388_v12  ;;  %v3541_v38 = vld [vmem:[#allocation2] ss:$8 sm:$0xf]  ;;  %v3589_v62 = vld [vmem:[#allocation2 + $0x1] ss:$8 sm:$0xf] }
  0x34   :  { %3333 = vmatprep.subr.bf16.mxu1 %v3389_v13  ;;  %v3543_v39 = vld [vmem:[#allocation2 + $0x20] ss:$8 sm:$0xf]  ;;  %v74_v42 = vrot.slane %v3541_v38, %v3533_v31  ;;  %v3555_v44 = vrot.slane %v3541_v38, %v3535_v33  ;;  %v3591_v63 = vld [vmem:[#allocation2 + $0x21] ss:$8 sm:$0xf]  ;;  %v290_v4 = vrot.slane %v3589_v62, %v3533_v31 }
  0x35   :  { %v3545_v40 = vld [vmem:[#allocation2 + $0x40] ss:$8 sm:$0xf]  ;;  %v90_v43 = vrot.slane %v3543_v39, %v3533_v31  ;;  %v3559_v45 = vrot.slane %v3543_v39, %v3535_v33  ;;  %v3593_v2 = vld [vmem:[#allocation2 + $0x41] ss:$8 sm:$0xf]  ;;  %v306_v5 = vrot.slane %v3591_v63, %v3533_v31 }
  0x36   :  { %3294 = vmatpush3.bf16.msra.mxu0 %v3390_v14  ;;  %v3547_v41 = vld [vmem:[#allocation2 + $0x60] ss:$8 sm:$0xf]  ;;  %v106_v48 = vrot.slane %v3545_v40, %v3533_v31  ;;  %v3571_v50 = vrot.slane %v3545_v40, %v3535_v33  ;;  %v228_v56 = vpack.c.bf16 %v74_v42, %v74_v42  ;;  %v3595_v3 = vld [vmem:[#allocation2 + $0x61] ss:$8 sm:$0xf]  ;;  %v322_v10 = vrot.slane %v3593_v2, %v3533_v31 }
  0x37   :  { %3334 = vmatpush3.bf16.msra.mxu1 %v3391_v15  ;;  %3295 = vmatprep.subr.bf16.mxu0 %v3392_v16  ;;  %v3561_v46 = vld [vmem:[#allocation2 + $0x80] ss:$8 sm:$0xf]  ;;  %v122_v49 = vrot.slane %v3547_v41, %v3533_v31  ;;  %v3575_v51 = vrot.slane %v3547_v41, %v3535_v33  ;;  %v232_v57 = vpack.c.bf16 %v90_v43, %v90_v43  ;;  %v3601_v8 = vld [vmem:[#allocation2 + $0x81] ss:$8 sm:$0xf] }
  0x38   :  { %3335 = vmatprep.subr.bf16.mxu1 %v3393_v17  ;;  %v3563_v47 = vld [vmem:[#allocation2 + $0xa0] ss:$8 sm:$0xf]  ;;  %v138_v54 = vrot.slane %v3561_v46, %v3533_v31  ;;  %v236_v60 = vpack.c.bf16 %v106_v48, %v106_v48  ;;  %v3603_v9 = vld [vmem:[#allocation2 + $0xa1] ss:$8 sm:$0xf]  ;;  %v338_v11 = vrot.slane %v3595_v3, %v3533_v31  ;;  %v354_v14 = vrot.slane %v3601_v8, %v3533_v31 }
  0x39   :  { %v3577_v52 = vld [vmem:[#allocation2 + $0xc0] ss:$8 sm:$0xf]  ;;  %v154_v55 = vrot.slane %v3563_v47, %v3533_v31  ;;  %v240_v61 = vpack.c.bf16 %v122_v49, %v122_v49  ;;  %v3609_v12 = vld [vmem:[#allocation2 + $0xc1] ss:$8 sm:$0xf]  ;;  %v370_v15 = vrot.slane %v3603_v9, %v3533_v31  ;;  %v444_v16 = vpack.c.bf16 %v290_v4, %v290_v4 }
  0x3a   :  { %3296 = vmatpush3.bf16.msra.mxu0 %v3394_v18  ;;  %v3579_v53 = vld [vmem:[#allocation2 + $0xe0] ss:$8 sm:$0xf]  ;;  %v170_v58 = vrot.slane %v3577_v52, %v3533_v31  ;;  %v244_v0 = vpack.c.bf16 %v138_v54, %v138_v54  ;;  %v3611_v13 = vld [vmem:[#allocation2 + $0xe1] ss:$8 sm:$0xf]  ;;  %v448_v17 = vpack.c.bf16 %v306_v5, %v306_v5  ;;  %v386_v18 = vrot.slane %v3609_v12, %v3533_v31 }
  0x3b   :  { %3336 = vmatpush3.bf16.msra.mxu1 %v3395_v19  ;;  %3297 = vmatprep.subr.bf16.mxu0 %v3396_v20  ;;  %v186_v59 = vrot.slane %v3579_v53, %v3533_v31  ;;  %v248_v1 = vpack.c.bf16 %v154_v55, %v154_v55  ;;  %v402_v19 = vrot.slane %v3611_v13, %v3533_v31  ;;  %v1935_v49 = vunpack.c.l.b16 %v444_v16 }
  0x3c   :  { %3337 = vmatprep.subr.bf16.mxu1 %v3397_v22  ;;  %v252_v6 = vpack.c.bf16 %v170_v58, %v170_v58  ;;  %v452_v20 = vpack.c.bf16 %v322_v10, %v322_v10  ;;  %v456_v21 = vpack.c.bf16 %v338_v11, %v338_v11  ;;  %v460_v22 = vpack.c.bf16 %v354_v14, %v354_v14 }
  0x3d   :  { %v256_v7 = vpack.c.bf16 %v186_v59, %v186_v59  ;;  %v468_v26 = vpack.c.bf16 %v386_v18, %v386_v18 }
  0x3e   :  { %3298 = vmatpush3.bf16.msra.mxu0 %v3398_v23  ;;  %v464_v23 = vpack.c.bf16 %v370_v15, %v370_v15  ;;  %v1943_v4 = vunpack.c.l.b16 %v452_v20  ;;  %v1947_v5 = vunpack.c.l.b16 %v456_v21 }
  0x3f   :  { %3338 = vmatpush3.bf16.msra.mxu1 %v3399_v24  ;;  %3299 = vmatprep.subr.bf16.mxu0 %v3400_v25  ;;  %v1804_v24 = vunpack.c.l.b16 %v228_v56  ;;  %v1808_v25 = vunpack.c.l.b16 %v232_v57  ;;  %v1939_v57 = vunpack.c.l.b16 %v448_v17 }
  0x40   :  { %3339 = vmatprep.subr.bf16.mxu1 %v3401_v27  ;;  %v472_v27 = vpack.c.bf16 %v402_v19, %v402_v19  ;;  %v1982_v11 = vrot.slane %v1943_v4, 6  ;;  %v1984_v15 = vrot.slane %v1947_v5, 5  ;;  %v362_v4 = vrot.slane %v3601_v8, %v3535_v33 }
  0x41   :  { %v1856_v42 = vrot.slane %v1808_v25, 7  ;;  %v1980_v10 = vrot.slane %v1939_v57, 7  ;;  %v162_v25 = vrot.slane %v3563_v47, %v3535_v33  ;;  %v378_v5 = vrot.slane %v3603_v9, %v3535_v33 }
  0x42   :  { %3300 = vmatpush3.bf16.msra.mxu0 %v3402_v28  ;;  %v1812_v28 = vunpack.c.l.b16 %v236_v60 }
  0x43   :  { %3340 = vmatpush3.bf16.msra.mxu1 %v3403_v29  ;;  %3301 = vmatprep.subr.bf16.mxu0 %v3404_v30  ;;  %v1816_v29 = vunpack.c.l.b16 %v240_v61  ;;  %v1820_v30 = vunpack.c.l.b16 %v244_v0  ;;  %v1857_v56 = vsel %vm1836_vm0, %v1856_v42, %v1804_v24  ;;  %v1951_v61 = vunpack.c.l.b16 %v460_v22 }
  0x44   :  { %3341 = vmatprep.subr.bf16.mxu1 %v3405_v32  ;;  %v1824_v32 = vunpack.c.l.b16 %v248_v1  ;;  %v1858_v43 = vrot.slane %v1812_v28, 6  ;;  %v1955_v0 = vunpack.c.l.b16 %v464_v23  ;;  %v1959_v1 = vunpack.c.l.b16 %v468_v26 }
  0x45   :  { %v1860_v48 = vrot.slane %v1816_v29, 5  ;;  %v1862_v54 = vrot.slane %v1820_v30, 4  ;;  %v1986_v16 = vrot.slane %v1951_v61, 4  ;;  %v1981_v19 = vsel %vm1836_vm0, %v1980_v10, %v1935_v49 }
  0x46   :  { %3302 = vmatpush3.bf16.msra.mxu0 %v3406_v34  ;;  %v1828_v34 = vunpack.c.l.b16 %v252_v6  ;;  %v1864_v55 = vrot.slane %v1824_v32, 3  ;;  %v1859_v60 = vsel %vm1839_vm1, %v1858_v43, %v1857_v56  ;;  %v1988_v18 = vrot.slane %v1955_v0, 3 }
  0x47   :  { %3342 = vmatpush3.bf16.msra.mxu1 %v3407_v36  ;;  %v1832_v36 = vunpack.c.l.b16 %v256_v7  ;;  %v1861_v6 = vsel %vm1842_vm2, %v1860_v48, %v1859_v60  ;;  %v1963_v7 = vunpack.c.l.b16 %v472_v27  ;;  %v1990_v20 = vrot.slane %v1959_v1, 2 }
  0x48   :  { %v1866_v58 = vrot.slane %v1828_v34, 2  ;;  %v1863_v14 = vsel %vm1845_vm3, %v1862_v54, %v1861_v6  ;;  %v1983_v23 = vsel %vm1839_vm1, %v1982_v11, %v1981_v19  ;;  %v146_v24 = vrot.slane %v3561_v46, %v3535_v33 }
  0x49   :  { %v1868_v59 = vrot.slane %v1832_v36, 1  ;;  %v1865_v17 = vsel %vm1848_vm4, %v1864_v55, %v1863_v14  ;;  %v1992_v21 = vrot.slane %v1963_v7, 1  ;;  %v1985_v27 = vsel %vm1842_vm2, %v1984_v15, %v1983_v23 }
  0x4a   :  { %v1867_v22 = vsel %vm1851_vm5, %v1866_v58, %v1865_v17  ;;  %v178_v28 = vrot.slane %v3577_v52, %v3535_v33  ;;  %v194_v29 = vrot.slane %v3579_v53, %v3535_v33  ;;  %v1987_v32 = vsel %vm1845_vm3, %v1986_v16, %v1985_v27 }
  0x4b   :  { %v1869_v26 = vsel %vm1854_vm6, %v1868_v59, %v1867_v22  ;;  %v230_v34 = vpack.c.bf16 %v3555_v44, %v3555_v44  ;;  %v234_v36 = vpack.c.bf16 %v3559_v45, %v3559_v45  ;;  %v1989_v42 = vsel %vm1848_vm4, %v1988_v18, %v1987_v32 }
  0x4c   :  { %v1899_v30 = vpack.c.b16 %v1869_v26, %v1869_v26  ;;  %v238_v43 = vpack.c.bf16 %v3571_v50, %v3571_v50  ;;  %v242_v48 = vpack.c.bf16 %v3575_v51, %v3575_v51  ;;  %v246_v49 = vpack.c.bf16 %v146_v24, %v146_v24 }
  0x4d   :  { %v1991_v54 = vsel %vm1851_vm5, %v1990_v20, %v1989_v42  ;;  %v250_v55 = vpack.c.bf16 %v162_v25, %v162_v25  ;;  %v254_v58 = vpack.c.bf16 %v178_v28, %v178_v28  ;;  %v258_v59 = vpack.c.bf16 %v194_v29, %v194_v29 }
  0x4e   :  { %v1993_v56 = vsel %vm1854_vm6, %v1992_v21, %v1991_v54  ;;  %v298_v44 = vrot.slane %v3589_v62, %v3535_v33  ;;  %v314_v45 = vrot.slane %v3591_v63, %v3535_v33  ;;  %v330_v50 = vrot.slane %v3593_v2, %v3535_v33 }
  0x4f   :  { %v2023_v57 = vpack.c.b16 %v1993_v56, %v1993_v56  ;;  %v346_v51 = vrot.slane %v3595_v3, %v3535_v33  ;;  %v394_v60 = vrot.slane %v3609_v12, %v3535_v33  ;;  %v410_v61 = vrot.slane %v3611_v13, %v3535_v33 }
  0x50   :  { %v446_v0 = vpack.c.bf16 %v298_v44, %v298_v44  ;;  %v450_v1 = vpack.c.bf16 %v314_v45, %v314_v45  ;;  %v454_v7 = vpack.c.bf16 %v330_v50, %v330_v50  ;;  %v462_v11 = vpack.c.bf16 %v362_v4, %v362_v4 }
  0x51   :  { %v2777_v6 = vsel %vm2770_vm7, %v1899_v30, %v2023_v57  ;;  %v458_v10 = vpack.c.bf16 %v346_v51, %v346_v51  ;;  %v466_v14 = vpack.c.bf16 %v378_v5, %v378_v5  ;;  %v470_v15 = vpack.c.bf16 %v394_v60, %v394_v60 }
  0x52   :  { %3130 = vmatprep.mubr.bf16.mxu0 %v2777_v6  ;;  %v474_v16 = vpack.c.bf16 %v410_v61, %v410_v61  ;;  %v1806_v18 = vunpack.c.l.b16 %v230_v34  ;;  %v1810_v17 = vunpack.c.l.b16 %v234_v36  ;;  %v1814_v19 = vunpack.c.l.b16 %v238_v43 }
  0x53   :  { %v1818_v20 = vunpack.c.l.b16 %v242_v48  ;;  %v1822_v21 = vunpack.c.l.b16 %v246_v49  ;;  %v1826_v22 = vunpack.c.l.b16 %v250_v55  ;;  %v1830_v23 = vunpack.c.l.b16 %v254_v58 }
  0x54   :  { %v1834_v24 = vunpack.c.l.b16 %v258_v59  ;;  %v1937_v25 = vunpack.c.l.b16 %v446_v0  ;;  %v1884_v26 = vrot.slane %v1810_v17, 7  ;;  %v1886_v27 = vrot.slane %v1814_v19, 6 }
  0x55   :  { %v1888_v28 = vrot.slane %v1818_v20, 5  ;;  %v1890_v29 = vrot.slane %v1822_v21, 4  ;;  %v1892_v30 = vrot.slane %v1826_v22, 3  ;;  %v1894_v32 = vrot.slane %v1830_v23, 2 }
  0x56   :  { %v1896_v42 = vrot.slane %v1834_v24, 1  ;;  %v1941_v54 = vunpack.c.l.b16 %v450_v1  ;;  %v1885_v56 = vsel %vm1836_vm0, %v1884_v26, %v1806_v18  ;;  %v1945_v44 = vunpack.c.l.b16 %v454_v7 }
  0x57   :  { %v1949_v34 = vunpack.c.l.b16 %v458_v10  ;;  %v1953_v36 = vunpack.c.l.b16 %v462_v11  ;;  %v1887_v43 = vsel %vm1839_vm1, %v1886_v27, %v1885_v56  ;;  %v1957_v48 = vunpack.c.l.b16 %v466_v14 }
  0x58   :  { %v1961_v49 = vunpack.c.l.b16 %v470_v15  ;;  %v1965_v55 = vunpack.c.l.b16 %v474_v16  ;;  %v1889_v58 = vsel %vm1842_vm2, %v1888_v28, %v1887_v43  ;;  %v2008_v59 = vrot.slane %v1941_v54, 7 }
  0x59   :  { %v2010_v45 = vrot.slane %v1945_v44, 6  ;;  %v2012_v50 = vrot.slane %v1949_v34, 5  ;;  %v1891_v57 = vsel %vm1845_vm3, %v1890_v29, %v1889_v58  ;;  %v2014_v51 = vrot.slane %v1953_v36, 4 }
  0x5a   :  { %v2016_v4 = vrot.slane %v1957_v48, 3  ;;  %v2018_v5 = vrot.slane %v1961_v49, 2  ;;  %v1893_v60 = vsel %vm1848_vm4, %v1892_v30, %v1891_v57  ;;  %v2009_v61 = vsel %vm1836_vm0, %v2008_v59, %v1937_v25 }
  0x5b   :  { %v2020_v0 = vrot.slane %v1965_v55, 1  ;;  %v70_v1 = vrot.slane %v3541_v38, %v3537_v35  ;;  %v1895_v6 = vsel %vm1851_vm5, %v1894_v32, %v1893_v60  ;;  %v2011_v7 = vsel %vm1839_vm1, %v2010_v45, %v2009_v61 }
  0x5c   :  { %v86_v10 = vrot.slane %v3543_v39, %v3537_v35  ;;  %v102_v11 = vrot.slane %v3545_v40, %v3537_v35  ;;  %v1897_v14 = vsel %vm1854_vm6, %v1896_v42, %v1895_v6  ;;  %v2013_v15 = vsel %vm1842_vm2, %v2012_v50, %v2011_v7 }
  0x5d   :  { %v118_v16 = vrot.slane %v3547_v41, %v3537_v35  ;;  %v134_v18 = vrot.slane %v3561_v46, %v3537_v35  ;;  %v1901_v17 = vpack.c.b16 %v1897_v14, %v1897_v14  ;;  %v2015_v19 = vsel %vm1845_vm3, %v2014_v51, %v2013_v15 }
  0x5e   :  { %v150_v20 = vrot.slane %v3563_v47, %v3537_v35  ;;  %v166_v21 = vrot.slane %v3577_v52, %v3537_v35  ;;  %v2017_v22 = vsel %vm1848_vm4, %v2016_v4, %v2015_v19  ;;  %v182_v23 = vrot.slane %v3579_v53, %v3537_v35 }
  0x5f   :  { %v227_v24 = vpack.c.bf16 %v70_v1, %v70_v1  ;;  %v231_v25 = vpack.c.bf16 %v86_v10, %v86_v10  ;;  %v2019_v26 = vsel %vm1851_vm5, %v2018_v5, %v2017_v22  ;;  %v235_v27 = vpack.c.bf16 %v102_v11, %v102_v11 }
  0x60   :  { %v239_v28 = vpack.c.bf16 %v118_v16, %v118_v16  ;;  %v243_v29 = vpack.c.bf16 %v134_v18, %v134_v18  ;;  %v2021_v30 = vsel %vm1854_vm6, %v2020_v0, %v2019_v26  ;;  %v247_v32 = vpack.c.bf16 %v150_v20, %v150_v20 }
  0x61   :  { %v251_v42 = vpack.c.bf16 %v166_v21, %v166_v21  ;;  %v255_v54 = vpack.c.bf16 %v182_v23, %v182_v23  ;;  %v2025_v56 = vpack.c.b16 %v2021_v30, %v2021_v30  ;;  %v286_v44 = vrot.slane %v3589_v62, %v3537_v35 }
  0x62   :  { %v302_v34 = vrot.slane %v3591_v63, %v3537_v35  ;;  %v318_v36 = vrot.slane %v3593_v2, %v3537_v35  ;;  %v334_v43 = vrot.slane %v3595_v3, %v3537_v35  ;;  %v350_v48 = vrot.slane %v3601_v8, %v3537_v35 }
  0x63   :  { %v366_v49 = vrot.slane %v3603_v9, %v3537_v35  ;;  %v382_v55 = vrot.slane %v3609_v12, %v3537_v35  ;;  %v2785_v58 = vsel %vm2770_vm7, %v1901_v17, %v2025_v56  ;;  %v398_v59 = vrot.slane %v3611_v13, %v3537_v35 }
  0x64   :  { %v443_v45 = vpack.c.bf16 %v286_v44, %v286_v44  ;;  %v447_v50 = vpack.c.bf16 %v302_v34, %v302_v34  ;;  %3195 = vmatprep.mubr.bf16.mxu1 %v2785_v58  ;;  %v451_v57 = vpack.c.bf16 %v318_v36, %v318_v36  ;;  %v455_v51 = vpack.c.bf16 %v334_v43, %v334_v43 }
  0x65   :  { %v459_v4 = vpack.c.bf16 %v350_v48, %v350_v48  ;;  %v463_v5 = vpack.c.bf16 %v366_v49, %v366_v49  ;;  %v467_v60 = vpack.c.bf16 %v382_v55, %v382_v55  ;;  %v471_v61 = vpack.c.bf16 %v398_v59, %v398_v59 }
  0x66   :  { %v1803_v0 = vunpack.c.l.b16 %v227_v24  ;;  %v1807_v1 = vunpack.c.l.b16 %v231_v25  ;;  %v1811_v6 = vunpack.c.l.b16 %v235_v27  ;;  %v1815_v7 = vunpack.c.l.b16 %v239_v28 }
  0x67   :  { %v1819_v10 = vunpack.c.l.b16 %v243_v29  ;;  %v1823_v11 = vunpack.c.l.b16 %v247_v32  ;;  %v1827_v14 = vunpack.c.l.b16 %v251_v42  ;;  %v1831_v15 = vunpack.c.l.b16 %v255_v54 }
  0x68   :  { %v1835_v16 = vrot.slane %v1807_v1, 7  ;;  %v1934_v18 = vunpack.c.l.b16 %v443_v45  ;;  %v1838_v17 = vrot.slane %v1811_v6, 6  ;;  %v1841_v19 = vrot.slane %v1815_v7, 5 }
  0x69   :  { %v1844_v20 = vrot.slane %v1819_v10, 4  ;;  %v1847_v21 = vrot.slane %v1823_v11, 3  ;;  %v1850_v23 = vrot.slane %v1827_v14, 2  ;;  %v1853_v26 = vrot.slane %v1831_v15, 1 }
  0x6a   :  { %v1837_v22 = vsel %vm1836_vm0, %v1835_v16, %v1803_v0  ;;  %v1938_v30 = vunpack.c.l.b16 %v447_v50  ;;  %v1942_v25 = vunpack.c.l.b16 %v451_v57  ;;  %v1946_v27 = vunpack.c.l.b16 %v455_v51 }
  0x6b   :  { %v1840_v24 = vsel %vm1839_vm1, %v1838_v17, %v1837_v22  ;;  %v1950_v28 = vunpack.c.l.b16 %v459_v4  ;;  %v1954_v32 = vunpack.c.l.b16 %v463_v5  ;;  %v1958_v42 = vunpack.c.l.b16 %v467_v60 }
  0x6c   :  { %v1843_v29 = vsel %vm1842_vm2, %v1841_v19, %v1840_v24  ;;  %v1962_v54 = vunpack.c.l.b16 %v471_v61  ;;  %v1966_v44 = vrot.slane %v1938_v30, 7  ;;  %v1968_v34 = vrot.slane %v1942_v25, 6 }
  0x6d   :  { %v1846_v56 = vsel %vm1845_vm3, %v1844_v20, %v1843_v29  ;;  %v1970_v36 = vrot.slane %v1946_v27, 5  ;;  %v1972_v48 = vrot.slane %v1950_v28, 4  ;;  %v1974_v49 = vrot.slane %v1954_v32, 3 }
  0x6e   :  { %v1849_v43 = vsel %vm1848_vm4, %v1847_v21, %v1846_v56  ;;  %v1976_v55 = vrot.slane %v1958_v42, 2  ;;  %v1967_v59 = vsel %vm1836_vm0, %v1966_v44, %v1934_v18  ;;  %v1978_v45 = vrot.slane %v1962_v54, 1 }
  0x6f   :  { %v1852_v58 = vsel %vm1851_vm5, %v1850_v23, %v1849_v43  ;;  %v78_v50 = vrot.slane %v3541_v38, %v3539_v37  ;;  %v1969_v51 = vsel %vm1839_vm1, %v1968_v34, %v1967_v59  ;;  %v94_v4 = vrot.slane %v3543_v39, %v3539_v37 }
  0x70   :  { %v1855_v57 = vsel %vm1854_vm6, %v1853_v26, %v1852_v58  ;;  %v110_v5 = vrot.slane %v3545_v40, %v3539_v37  ;;  %v1971_v61 = vsel %vm1842_vm2, %v1970_v36, %v1969_v51  ;;  %v126_v0 = vrot.slane %v3547_v41, %v3539_v37 }
  0x71   :  { %v1898_v60 = vpack.c.b16 %v1855_v57, %v1855_v57  ;;  %v142_v1 = vrot.slane %v3561_v46, %v3539_v37  ;;  %v1973_v38 = vsel %vm1845_vm3, %v1972_v48, %v1971_v61  ;;  %v158_v6 = vrot.slane %v3563_v47, %v3539_v37  ;;  %v3763_v57 = vld [vmem:[#allocation2 + $0x2] ss:$8 sm:$0xf] }
  0x72   :  { %v174_v39 = vrot.slane %v3577_v52, %v3539_v37  ;;  %v190_v40 = vrot.slane %v3579_v53, %v3539_v37  ;;  %v1975_v7 = vsel %vm1848_vm4, %v1974_v49, %v1973_v38  ;;  %v229_v10 = vpack.c.bf16 %v78_v50, %v78_v50  ;;  %v3766_v61 = vld [vmem:[#allocation2 + $0x22] ss:$8 sm:$0xf] }
  0x73   :  { %v233_v11 = vpack.c.bf16 %v94_v4, %v94_v4  ;;  %v237_v14 = vpack.c.bf16 %v110_v5, %v110_v5  ;;  %v1977_v41 = vsel %vm1851_vm5, %v1976_v55, %v1975_v7  ;;  %v241_v15 = vpack.c.bf16 %v126_v0, %v126_v0  ;;  %v3768_v0 = vld [vmem:[#allocation2 + $0x42] ss:$8 sm:$0xf] }
  0x74   :  { %v245_v46 = vpack.c.bf16 %v142_v1, %v142_v1  ;;  %v249_v16 = vpack.c.bf16 %v158_v6, %v158_v6  ;;  %v1979_v18 = vsel %vm1854_vm6, %v1978_v45, %v1977_v41  ;;  %v253_v17 = vpack.c.bf16 %v174_v39, %v174_v39  ;;  %v3773_v7 = vld [vmem:[#allocation2 + $0x82] ss:$8 sm:$0xf] }
  0x75   :  { %v257_v47 = vpack.c.bf16 %v190_v40, %v190_v40  ;;  %v294_v52 = vrot.slane %v3589_v62, %v3539_v37  ;;  %v2022_v19 = vpack.c.b16 %v1979_v18, %v1979_v18  ;;  %v310_v53 = vrot.slane %v3591_v63, %v3539_v37  ;;  %v3771_v40 = vld [vmem:[#allocation2 + $0x62] ss:$8 sm:$0xf] }
  0x76   :  { %v326_v20 = vrot.slane %v3593_v2, %v3539_v37  ;;  %v342_v21 = vrot.slane %v3595_v3, %v3539_v37  ;;  %v358_v22 = vrot.slane %v3601_v8, %v3539_v37  ;;  %v374_v23 = vrot.slane %v3603_v9, %v3539_v37 }
  0x77   :  { %v390_v26 = vrot.slane %v3609_v12, %v3539_v37  ;;  %v406_v62 = vrot.slane %v3611_v13, %v3539_v37  ;;  %v2773_v63 = vsel %vm2770_vm7, %v1898_v60, %v2022_v19  ;;  %v445_v30 = vpack.c.bf16 %v294_v52, %v294_v52 }
  0x78   :  { %v449_v24 = vpack.c.bf16 %v310_v53, %v310_v53  ;;  %v453_v2 = vpack.c.bf16 %v326_v20, %v326_v20  ;;  %3131 = vmatmul.mubr.bf16.vlgmr.msra.gmra.mrb[0].mxu0 %v2773_v63  ;;  %v457_v25 = vpack.c.bf16 %v342_v21, %v342_v21  ;;  %v461_v3 = vpack.c.bf16 %v358_v22, %v358_v22  ;;  %v3784_v20 = vld [vmem:[#allocation2 + $0xe2] ss:$8 sm:$0xf] }
  0x79   :  { %v465_v27 = vpack.c.bf16 %v374_v23, %v374_v23  ;;  %v469_v28 = vpack.c.bf16 %v390_v26, %v390_v26  ;;  %v473_v8 = vpack.c.bf16 %v406_v62, %v406_v62  ;;  %v1805_v29 = vunpack.c.l.b16 %v229_v10 }
  0x7a   :  { %v1809_v32 = vunpack.c.l.b16 %v233_v11  ;;  %v1813_v9 = vunpack.c.l.b16 %v237_v14  ;;  %v1817_v42 = vunpack.c.l.b16 %v241_v15  ;;  %v1821_v54 = vunpack.c.l.b16 %v245_v46  ;;  %v3776_v15 = vld [vmem:[#allocation2 + $0xa2] ss:$8 sm:$0xf] }
  0x7b   :  { %v1825_v12 = vunpack.c.l.b16 %v249_v16  ;;  %v1829_v56 = vunpack.c.l.b16 %v253_v17  ;;  %v1833_v44 = vunpack.c.l.b16 %v257_v47  ;;  %v1936_v36 = vunpack.c.l.b16 %v445_v30  ;;  %v3780_v47 = vld [vmem:[#allocation2 + $0xc2] ss:$8 sm:$0xf] }
  0x7c   :  { %v1870_v13 = vrot.slane %v1809_v32, 7  ;;  %v1872_v34 = vrot.slane %v1813_v9, 6  ;;  %v1874_v43 = vrot.slane %v1817_v42, 5  ;;  %v1876_v48 = vrot.slane %v1821_v54, 4 }
  0x7d   :  { %v1878_v49 = vrot.slane %v1825_v12, 3  ;;  %v1880_v55 = vrot.slane %v1829_v56, 2  ;;  %v1882_v59 = vrot.slane %v1833_v44, 1  ;;  %v1940_v45 = vunpack.c.l.b16 %v449_v24  ;;  %v3810_v32 = vld [vmem:[#allocation2 + $0x43] ss:$8 sm:$0xf] }
  0x7e   :  { %v1871_v58 = vsel %vm1836_vm0, %v1870_v13, %v1805_v29  ;;  %v1944_v50 = vunpack.c.l.b16 %v453_v2  ;;  %v1948_v4 = vunpack.c.l.b16 %v457_v25  ;;  %v1952_v5 = vunpack.c.l.b16 %v461_v3  ;;  %v3799_v25 = vld [vmem:[#allocation2 + $0x3] ss:$8 sm:$0xf] }
  0x7f   :  { %v1873_v51 = vsel %vm1839_vm1, %v1872_v34, %v1871_v58  ;;  %v1956_v60 = vunpack.c.l.b16 %v465_v27  ;;  %v1960_v38 = vunpack.c.l.b16 %v469_v28  ;;  %v1964_v6 = vunpack.c.l.b16 %v473_v8  ;;  %v3801_v3 = vld [vmem:[#allocation2 + $0x23] ss:$8 sm:$0xf] }
  0x80   :  { %v1875_v1 = vsel %vm1842_vm2, %v1874_v43, %v1873_v51  ;;  %v1994_v39 = vrot.slane %v1940_v45, 7  ;;  %v1996_v11 = vrot.slane %v1944_v50, 6  ;;  %v1998_v14 = vrot.slane %v1948_v4, 5  ;;  %v3812_v9 = vld [vmem:[#allocation2 + $0x63] ss:$8 sm:$0xf] }
  0x81   :  { %v1877_v10 = vsel %vm1845_vm3, %v1876_v48, %v1875_v1  ;;  %v2000_v41 = vrot.slane %v1952_v5, 4  ;;  %v2002_v18 = vrot.slane %v1956_v60, 3  ;;  %v2004_v17 = vrot.slane %v1960_v38, 2  ;;  %v3815_v44 = vld [vmem:[#allocation2 + $0x83] ss:$8 sm:$0xf] }
  0x82   :  { %v1879_v46 = vsel %vm1848_vm4, %v1878_v49, %v1877_v10  ;;  %v1995_v16 = vsel %vm1836_vm0, %v1994_v39, %v1936_v36  ;;  %v2006_v53 = vrot.slane %v1964_v6, 1  ;;  %v506_v21 = vrot.slane %v3763_v57, %v3533_v31  ;;  %v3817_v13 = vld [vmem:[#allocation2 + $0xa3] ss:$8 sm:$0xf] }
  0x83   :  { %v1881_v52 = vsel %vm1851_vm5, %v1880_v55, %v1879_v46  ;;  %v1997_v19 = vsel %vm1839_vm1, %v1996_v11, %v1995_v16  ;;  %v522_v26 = vrot.slane %v3766_v61, %v3533_v31  ;;  %v538_v62 = vrot.slane %v3768_v0, %v3533_v31  ;;  %v3820_v49 = vld [vmem:[#allocation2 + $0xc3] ss:$8 sm:$0xf] }
  0x84   :  { %v1883_v22 = vsel %vm1854_vm6, %v1882_v59, %v1881_v52  ;;  %v1999_v23 = vsel %vm1842_vm2, %v1998_v14, %v1997_v19  ;;  %v554_v24 = vrot.slane %v3771_v40, %v3533_v31  ;;  %v570_v2 = vrot.slane %v3773_v7, %v3533_v31  ;;  %v3822_v55 = vld [vmem:[#allocation2 + $0xe3] ss:$8 sm:$0xf] }
  0x85   :  { %v1900_v63 = vpack.c.b16 %v1883_v22, %v1883_v22  ;;  %v2001_v30 = vsel %vm1845_vm3, %v2000_v41, %v1999_v23  ;;  %v586_v28 = vrot.slane %v3776_v15, %v3533_v31  ;;  %v602_v8 = vrot.slane %v3780_v47, %v3533_v31 }
  0x86   :  { %v2003_v27 = vsel %vm1848_vm4, %v2002_v18, %v2001_v30  ;;  %v618_v29 = vrot.slane %v3784_v20, %v3533_v31  ;;  %v660_v54 = vpack.c.bf16 %v506_v21, %v506_v21  ;;  %v664_v12 = vpack.c.bf16 %v522_v26, %v522_v26 }
  0x87   :  { %v2005_v42 = vsel %vm1851_vm5, %v2004_v17, %v2003_v27  ;;  %v668_v56 = vpack.c.bf16 %v538_v62, %v538_v62  ;;  %v672_v36 = vpack.c.bf16 %v554_v24, %v554_v24  ;;  %v676_v43 = vpack.c.bf16 %v570_v2, %v570_v2 }
  0x88   :  { %v2007_v34 = vsel %vm1854_vm6, %v2006_v53, %v2005_v42  ;;  %v680_v48 = vpack.c.bf16 %v586_v28, %v586_v28  ;;  %v684_v59 = vpack.c.bf16 %v602_v8, %v602_v8  ;;  %v688_v45 = vpack.c.bf16 %v618_v29, %v618_v29 }
  0x89   :  { %v2024_v58 = vpack.c.b16 %v2007_v34, %v2007_v34  ;;  %v722_v50 = vrot.slane %v3799_v25, %v3533_v31  ;;  %v738_v51 = vrot.slane %v3801_v3, %v3533_v31  ;;  %v754_v4 = vrot.slane %v3810_v32, %v3533_v31 }
  0x8a   :  { %v770_v5 = vrot.slane %v3812_v9, %v3533_v31  ;;  %v786_v60 = vrot.slane %v3815_v44, %v3533_v31  ;;  %v802_v38 = vrot.slane %v3817_v13, %v3533_v31  ;;  %v818_v6 = vrot.slane %v3820_v49, %v3533_v31 }
  0x8b   :  { %v2781_v1 = vsel %vm2770_vm7, %v1900_v63, %v2024_v58  ;;  %v834_v39 = vrot.slane %v3822_v55, %v3533_v31  ;;  %v876_v10 = vpack.c.bf16 %v722_v50, %v722_v50  ;;  %v880_v11 = vpack.c.bf16 %v738_v51, %v738_v51 }
  0x8c   :  { %3196 = vmatmul.mubr.bf16.vlgmr.msra.gmra.mrb[0].mxu1 %v2781_v1  ;;  %v884_v14 = vpack.c.bf16 %v754_v4, %v754_v4  ;;  %v888_v41 = vpack.c.bf16 %v770_v5, %v770_v5  ;;  %v892_v46 = vpack.c.bf16 %v786_v60, %v786_v60  ;;  %v896_v16 = vpack.c.bf16 %v802_v38, %v802_v38 }
  0x8d   :  { %v900_v18 = vpack.c.bf16 %v818_v6, %v818_v6  ;;  %v904_v17 = vpack.c.bf16 %v834_v39, %v834_v39  ;;  %v2059_v52 = vunpack.c.l.b16 %v660_v54  ;;  %v2063_v19 = vunpack.c.l.b16 %v664_v12 }
  0x8e   :  { %v2067_v53 = vunpack.c.l.b16 %v668_v56  ;;  %v2071_v21 = vunpack.c.l.b16 %v672_v36  ;;  %v2075_v22 = vunpack.c.l.b16 %v676_v43  ;;  %v2079_v23 = vunpack.c.l.b16 %v680_v48 }
  0x8f   :  { %v2083_v26 = vunpack.c.l.b16 %v684_v59  ;;  %v2087_v62 = vunpack.c.l.b16 %v688_v45  ;;  %v2104_v63 = vrot.slane %v2063_v19, 7  ;;  %v2183_v2 = vunpack.c.l.b16 %v876_v10 }
  0x90   :  { %v2106_v30 = vrot.slane %v2067_v53, 6  ;;  %v2108_v24 = vrot.slane %v2071_v21, 5  ;;  %v2110_v27 = vrot.slane %v2075_v22, 4  ;;  %v2112_v28 = vrot.slane %v2079_v23, 3 }
  0x91   :  { %v2114_v8 = vrot.slane %v2083_v26, 2  ;;  %v2116_v29 = vrot.slane %v2087_v62, 1  ;;  %v2105_v42 = vsel %vm1836_vm0, %v2104_v63, %v2059_v52  ;;  %v2187_v34 = vunpack.c.l.b16 %v880_v11 }
  0x92   :  { %v2191_v58 = vunpack.c.l.b16 %v884_v14  ;;  %v2195_v54 = vunpack.c.l.b16 %v888_v41  ;;  %v2107_v12 = vsel %vm1839_vm1, %v2106_v30, %v2105_v42  ;;  %v2199_v56 = vunpack.c.l.b16 %v892_v46 }
  0x93   :  { %v2203_v36 = vunpack.c.l.b16 %v896_v16  ;;  %v2207_v43 = vunpack.c.l.b16 %v900_v18  ;;  %v2109_v48 = vsel %vm1842_vm2, %v2108_v24, %v2107_v12  ;;  %v2211_v59 = vunpack.c.l.b16 %v904_v17 }
  0x94   :  { %v2228_v45 = vrot.slane %v2187_v34, 7  ;;  %v2230_v50 = vrot.slane %v2191_v58, 6  ;;  %v2111_v51 = vsel %vm1845_vm3, %v2110_v27, %v2109_v48  ;;  %v2232_v4 = vrot.slane %v2195_v54, 5 }
  0x95   :  { %v2234_v5 = vrot.slane %v2199_v56, 4  ;;  %v2236_v60 = vrot.slane %v2203_v36, 3  ;;  %v2113_v1 = vsel %vm1848_vm4, %v2112_v28, %v2111_v51  ;;  %v2238_v6 = vrot.slane %v2207_v43, 2 }
  0x96   :  { %v2229_v38 = vsel %vm1836_vm0, %v2228_v45, %v2183_v2  ;;  %v2240_v39 = vrot.slane %v2211_v59, 1  ;;  %v2115_v10 = vsel %vm1851_vm5, %v2114_v8, %v2113_v1  ;;  %v514_v14 = vrot.slane %v3763_v57, %v3535_v33 }
  0x97   :  { %v2231_v11 = vsel %vm1839_vm1, %v2230_v50, %v2229_v38  ;;  %v530_v41 = vrot.slane %v3766_v61, %v3535_v33  ;;  %v2117_v46 = vsel %vm1854_vm6, %v2116_v29, %v2115_v10  ;;  %v546_v18 = vrot.slane %v3768_v0, %v3535_v33 }
  0x98   :  { %v2233_v16 = vsel %vm1842_vm2, %v2232_v4, %v2231_v11  ;;  %v562_v17 = vrot.slane %v3771_v40, %v3535_v33  ;;  %v2147_v52 = vpack.c.b16 %v2117_v46, %v2117_v46  ;;  %v578_v53 = vrot.slane %v3773_v7, %v3535_v33 }
  0x99   :  { %v2235_v19 = vsel %vm1845_vm3, %v2234_v5, %v2233_v16  ;;  %v594_v21 = vrot.slane %v3776_v15, %v3535_v33  ;;  %v610_v23 = vrot.slane %v3780_v47, %v3535_v33  ;;  %v626_v26 = vrot.slane %v3784_v20, %v3535_v33 }
  0x9a   :  { %v2237_v22 = vsel %vm1848_vm4, %v2236_v60, %v2235_v19  ;;  %v662_v62 = vpack.c.bf16 %v514_v14, %v514_v14  ;;  %v666_v30 = vpack.c.bf16 %v530_v41, %v530_v41  ;;  %v670_v24 = vpack.c.bf16 %v546_v18, %v546_v18 }
  0x9b   :  { %v2239_v63 = vsel %vm1851_vm5, %v2238_v6, %v2237_v22  ;;  %v674_v2 = vpack.c.bf16 %v562_v17, %v562_v17  ;;  %v678_v28 = vpack.c.bf16 %v578_v53, %v578_v53  ;;  %v682_v8 = vpack.c.bf16 %v594_v21, %v594_v21 }
  0x9c   :  { %v2241_v27 = vsel %vm1854_vm6, %v2240_v39, %v2239_v63  ;;  %v686_v29 = vpack.c.bf16 %v610_v23, %v610_v23  ;;  %v690_v34 = vpack.c.bf16 %v626_v26, %v626_v26  ;;  %v730_v58 = vrot.slane %v3799_v25, %v3535_v33 }
  0x9d   :  { %v2271_v42 = vpack.c.b16 %v2241_v27, %v2241_v27  ;;  %v746_v54 = vrot.slane %v3801_v3, %v3535_v33  ;;  %v762_v12 = vrot.slane %v3810_v32, %v3535_v33  ;;  %v778_v56 = vrot.slane %v3812_v9, %v3535_v33 }
  0x9e   :  { %v794_v36 = vrot.slane %v3815_v44, %v3535_v33  ;;  %v810_v43 = vrot.slane %v3817_v13, %v3535_v33  ;;  %v826_v59 = vrot.slane %v3820_v49, %v3535_v33  ;;  %v842_v45 = vrot.slane %v3822_v55, %v3535_v33 }
  0x9f   :  { %v2793_v48 = vsel %vm2770_vm7, %v2147_v52, %v2271_v42  ;;  %v878_v50 = vpack.c.bf16 %v730_v58, %v730_v58  ;;  %v882_v51 = vpack.c.bf16 %v746_v54, %v746_v54  ;;  %v886_v4 = vpack.c.bf16 %v762_v12, %v762_v12 }
  0xa0   :  { %3138 = vmatprep.mubr.bf16.mxu0 %v2793_v48  ;;  %v890_v5 = vpack.c.bf16 %v778_v56, %v778_v56  ;;  %v894_v60 = vpack.c.bf16 %v794_v36, %v794_v36  ;;  %v898_v1 = vpack.c.bf16 %v810_v43, %v810_v43  ;;  %v902_v38 = vpack.c.bf16 %v826_v59, %v826_v59 }
  0xa1   :  { %v906_v6 = vpack.c.bf16 %v842_v45, %v842_v45  ;;  %v2061_v39 = vunpack.c.l.b16 %v662_v62  ;;  %v2065_v10 = vunpack.c.l.b16 %v666_v30  ;;  %v2069_v11 = vunpack.c.l.b16 %v670_v24 }
  0xa2   :  { %v2073_v14 = vunpack.c.l.b16 %v674_v2  ;;  %v2077_v41 = vunpack.c.l.b16 %v678_v28  ;;  %v2081_v46 = vunpack.c.l.b16 %v682_v8  ;;  %v2085_v16 = vunpack.c.l.b16 %v686_v29 }
  0xa3   :  { %v2089_v18 = vunpack.c.l.b16 %v690_v34  ;;  %v2185_v17 = vunpack.c.l.b16 %v878_v50  ;;  %v2132_v52 = vrot.slane %v2065_v10, 7  ;;  %v2134_v19 = vrot.slane %v2069_v11, 6 }
  0xa4   :  { %v2136_v53 = vrot.slane %v2073_v14, 5  ;;  %v2138_v21 = vrot.slane %v2077_v41, 4  ;;  %v2140_v22 = vrot.slane %v2081_v46, 3  ;;  %v2142_v23 = vrot.slane %v2085_v16, 2 }
  0xa5   :  { %v2144_v26 = vrot.slane %v2089_v18, 1  ;;  %v2189_v63 = vunpack.c.l.b16 %v882_v51  ;;  %v2133_v27 = vsel %vm1836_vm0, %v2132_v52, %v2061_v39  ;;  %v2193_v42 = vunpack.c.l.b16 %v886_v4 }
  0xa6   :  { %v2197_v62 = vunpack.c.l.b16 %v890_v5  ;;  %v2201_v30 = vunpack.c.l.b16 %v894_v60  ;;  %v2135_v24 = vsel %vm1839_vm1, %v2134_v19, %v2133_v27  ;;  %v2205_v2 = vunpack.c.l.b16 %v898_v1 }
  0xa7   :  { %v2209_v28 = vunpack.c.l.b16 %v902_v38  ;;  %v2213_v8 = vunpack.c.l.b16 %v906_v6  ;;  %v2137_v29 = vsel %vm1842_vm2, %v2136_v53, %v2135_v24  ;;  %v2256_v34 = vrot.slane %v2189_v63, 7 }
  0xa8   :  { %v2258_v58 = vrot.slane %v2193_v42, 6  ;;  %v2260_v54 = vrot.slane %v2197_v62, 5  ;;  %v2139_v12 = vsel %vm1845_vm3, %v2138_v21, %v2137_v29  ;;  %v2262_v56 = vrot.slane %v2201_v30, 4 }
  0xa9   :  { %v2264_v36 = vrot.slane %v2205_v2, 3  ;;  %v2266_v43 = vrot.slane %v2209_v28, 2  ;;  %v2141_v48 = vsel %vm1848_vm4, %v2140_v22, %v2139_v12  ;;  %v2257_v59 = vsel %vm1836_vm0, %v2256_v34, %v2185_v17 }
  0xaa   :  { %v2268_v45 = vrot.slane %v2213_v8, 1  ;;  %v502_v50 = vrot.slane %v3763_v57, %v3537_v35  ;;  %v2143_v51 = vsel %vm1851_vm5, %v2142_v23, %v2141_v48  ;;  %v2259_v4 = vsel %vm1839_vm1, %v2258_v58, %v2257_v59 }
  0xab   :  { %v518_v5 = vrot.slane %v3766_v61, %v3537_v35  ;;  %v534_v60 = vrot.slane %v3768_v0, %v3537_v35  ;;  %v2145_v1 = vsel %vm1854_vm6, %v2144_v26, %v2143_v51  ;;  %v2261_v38 = vsel %vm1842_vm2, %v2260_v54, %v2259_v4 }
  0xac   :  { %v550_v6 = vrot.slane %v3771_v40, %v3537_v35  ;;  %v566_v39 = vrot.slane %v3773_v7, %v3537_v35  ;;  %v2149_v10 = vpack.c.b16 %v2145_v1, %v2145_v1  ;;  %v2263_v11 = vsel %vm1845_vm3, %v2262_v56, %v2261_v38 }
  0xad   :  { %v582_v14 = vrot.slane %v3776_v15, %v3537_v35  ;;  %v598_v41 = vrot.slane %v3780_v47, %v3537_v35  ;;  %v2265_v46 = vsel %vm1848_vm4, %v2264_v36, %v2263_v11  ;;  %v614_v16 = vrot.slane %v3784_v20, %v3537_v35 }
  0xae   :  { %v659_v18 = vpack.c.bf16 %v502_v50, %v502_v50  ;;  %v663_v17 = vpack.c.bf16 %v518_v5, %v518_v5  ;;  %v2267_v52 = vsel %vm1851_vm5, %v2266_v43, %v2265_v46  ;;  %v667_v19 = vpack.c.bf16 %v534_v60, %v534_v60 }
  0xaf   :  { %v671_v53 = vpack.c.bf16 %v550_v6, %v550_v6  ;;  %v675_v21 = vpack.c.bf16 %v566_v39, %v566_v39  ;;  %v2269_v22 = vsel %vm1854_vm6, %v2268_v45, %v2267_v52  ;;  %v679_v23 = vpack.c.bf16 %v582_v14, %v582_v14 }
  0xb0   :  { %v683_v26 = vpack.c.bf16 %v598_v41, %v598_v41  ;;  %v687_v63 = vpack.c.bf16 %v614_v16, %v614_v16  ;;  %v2273_v27 = vpack.c.b16 %v2269_v22, %v2269_v22  ;;  %v718_v42 = vrot.slane %v3799_v25, %v3537_v35 }
  0xb1   :  { %v734_v62 = vrot.slane %v3801_v3, %v3537_v35  ;;  %v750_v30 = vrot.slane %v3810_v32, %v3537_v35  ;;  %v766_v24 = vrot.slane %v3812_v9, %v3537_v35  ;;  %v782_v2 = vrot.slane %v3815_v44, %v3537_v35 }
  0xb2   :  { %v798_v28 = vrot.slane %v3817_v13, %v3537_v35  ;;  %v814_v8 = vrot.slane %v3820_v49, %v3537_v35  ;;  %v2801_v29 = vsel %vm2770_vm7, %v2149_v10, %v2273_v27  ;;  %v830_v34 = vrot.slane %v3822_v55, %v3537_v35 }
  0xb3   :  { %v875_v58 = vpack.c.bf16 %v718_v42, %v718_v42  ;;  %v879_v54 = vpack.c.bf16 %v734_v62, %v734_v62  ;;  %3203 = vmatprep.mubr.bf16.mxu1 %v2801_v29  ;;  %v883_v12 = vpack.c.bf16 %v750_v30, %v750_v30  ;;  %v887_v56 = vpack.c.bf16 %v766_v24, %v766_v24 }
  0xb4   :  { %v891_v36 = vpack.c.bf16 %v782_v2, %v782_v2  ;;  %v895_v43 = vpack.c.bf16 %v798_v28, %v798_v28  ;;  %v899_v48 = vpack.c.bf16 %v814_v8, %v814_v8  ;;  %v903_v59 = vpack.c.bf16 %v830_v34, %v830_v34 }
  0xb5   :  { %v2058_v45 = vunpack.c.l.b16 %v659_v18  ;;  %v2062_v50 = vunpack.c.l.b16 %v663_v17  ;;  %v2066_v51 = vunpack.c.l.b16 %v667_v19  ;;  %v2070_v4 = vunpack.c.l.b16 %v671_v53 }
  0xb6   :  { %v2074_v5 = vunpack.c.l.b16 %v675_v21  ;;  %v2078_v60 = vunpack.c.l.b16 %v679_v23  ;;  %v2082_v1 = vunpack.c.l.b16 %v683_v26  ;;  %v2086_v38 = vunpack.c.l.b16 %v687_v63 }
  0xb7   :  { %v2090_v6 = vrot.slane %v2062_v50, 7  ;;  %v2182_v39 = vunpack.c.l.b16 %v875_v58  ;;  %v2092_v10 = vrot.slane %v2066_v51, 6  ;;  %v2094_v11 = vrot.slane %v2070_v4, 5 }
  0xb8   :  { %v2096_v14 = vrot.slane %v2074_v5, 4  ;;  %v2098_v41 = vrot.slane %v2078_v60, 3  ;;  %v2100_v16 = vrot.slane %v2082_v1, 2  ;;  %v2102_v52 = vrot.slane %v2086_v38, 1 }
  0xb9   :  { %v2091_v46 = vsel %vm1836_vm0, %v2090_v6, %v2058_v45  ;;  %v2186_v22 = vunpack.c.l.b16 %v879_v54  ;;  %v2190_v17 = vunpack.c.l.b16 %v883_v12  ;;  %v2194_v19 = vunpack.c.l.b16 %v887_v56 }
  0xba   :  { %v2093_v18 = vsel %vm1839_vm1, %v2092_v10, %v2091_v46  ;;  %v2198_v53 = vunpack.c.l.b16 %v891_v36  ;;  %v2202_v23 = vunpack.c.l.b16 %v895_v43  ;;  %v2206_v26 = vunpack.c.l.b16 %v899_v48 }
  0xbb   :  { %v2095_v21 = vsel %vm1842_vm2, %v2094_v11, %v2093_v18  ;;  %v2210_v63 = vunpack.c.l.b16 %v903_v59  ;;  %v2214_v42 = vrot.slane %v2186_v22, 7  ;;  %v2216_v62 = vrot.slane %v2190_v17, 6 }
  0xbc   :  { %v2097_v27 = vsel %vm1845_vm3, %v2096_v14, %v2095_v21  ;;  %v2218_v30 = vrot.slane %v2194_v19, 5  ;;  %v2220_v2 = vrot.slane %v2198_v53, 4  ;;  %v2222_v28 = vrot.slane %v2202_v23, 3 }
  0xbd   :  { %v2099_v24 = vsel %vm1848_vm4, %v2098_v41, %v2097_v27  ;;  %v2224_v8 = vrot.slane %v2206_v26, 2  ;;  %v2215_v34 = vsel %vm1836_vm0, %v2214_v42, %v2182_v39  ;;  %v2226_v58 = vrot.slane %v2210_v63, 1 }
  0xbe   :  { %v2101_v29 = vsel %vm1851_vm5, %v2100_v16, %v2099_v24  ;;  %v510_v54 = vrot.slane %v3763_v57, %v3539_v37  ;;  %v2217_v56 = vsel %vm1839_vm1, %v2216_v62, %v2215_v34  ;;  %v526_v36 = vrot.slane %v3766_v61, %v3539_v37 }
  0xbf   :  { %v2103_v12 = vsel %vm1854_vm6, %v2102_v52, %v2101_v29  ;;  %v542_v43 = vrot.slane %v3768_v0, %v3539_v37  ;;  %v2219_v59 = vsel %vm1842_vm2, %v2218_v30, %v2217_v56  ;;  %v558_v45 = vrot.slane %v3771_v40, %v3539_v37 }
  0xc0   :  { %v2146_v48 = vpack.c.b16 %v2103_v12, %v2103_v12  ;;  %v574_v50 = vrot.slane %v3773_v7, %v3539_v37  ;;  %v2221_v57 = vsel %vm1845_vm3, %v2220_v2, %v2219_v59  ;;  %v590_v51 = vrot.slane %v3776_v15, %v3539_v37  ;;  %v3986_v59 = vld [vmem:[#allocation2 + $0x24] ss:$8 sm:$0xf] }
  0xc1   :  { %v606_v61 = vrot.slane %v3780_v47, %v3539_v37  ;;  %v622_v0 = vrot.slane %v3784_v20, %v3539_v37  ;;  %v2223_v4 = vsel %vm1848_vm4, %v2222_v28, %v2221_v57  ;;  %v661_v5 = vpack.c.bf16 %v510_v54, %v510_v54 }
  0xc2   :  { %v665_v60 = vpack.c.bf16 %v526_v36, %v526_v36  ;;  %v669_v1 = vpack.c.bf16 %v542_v43, %v542_v43  ;;  %v2225_v40 = vsel %vm1851_vm5, %v2224_v8, %v2223_v4  ;;  %v673_v38 = vpack.c.bf16 %v558_v45, %v558_v45  ;;  %v3988_v45 = vld [vmem:[#allocation2 + $0x44] ss:$8 sm:$0xf] }
  0xc3   :  { %v677_v7 = vpack.c.bf16 %v574_v50, %v574_v50  ;;  %v681_v6 = vpack.c.bf16 %v590_v51, %v590_v51  ;;  %v2227_v39 = vsel %vm1854_vm6, %v2226_v58, %v2225_v40  ;;  %v685_v10 = vpack.c.bf16 %v606_v61, %v606_v61  ;;  %v3993_v4 = vld [vmem:[#allocation2 + $0x84] ss:$8 sm:$0xf] }
  0xc4   :  { %v689_v15 = vpack.c.bf16 %v622_v0, %v622_v0  ;;  %v726_v47 = vrot.slane %v3799_v25, %v3539_v37  ;;  %v2270_v11 = vpack.c.b16 %v2227_v39, %v2227_v39  ;;  %v742_v20 = vrot.slane %v3801_v3, %v3539_v37  ;;  %v3991_v0 = vld [vmem:[#allocation2 + $0x64] ss:$8 sm:$0xf] }
  0xc5   :  { %v758_v14 = vrot.slane %v3810_v32, %v3539_v37  ;;  %v774_v41 = vrot.slane %v3812_v9, %v3539_v37  ;;  %v790_v46 = vrot.slane %v3815_v44, %v3539_v37  ;;  %v806_v16 = vrot.slane %v3817_v13, %v3539_v37 }
  0xc6   :  { %v822_v52 = vrot.slane %v3820_v49, %v3539_v37  ;;  %v838_v25 = vrot.slane %v3822_v55, %v3539_v37  ;;  %v2789_v3 = vsel %vm2770_vm7, %v2146_v48, %v2270_v11  ;;  %v877_v22 = vpack.c.bf16 %v726_v47, %v726_v47  ;;  %v3984_v48 = vld [vmem:[#allocation2 + $0x4] ss:$8 sm:$0xf] }
  0xc7   :  { %v881_v18 = vpack.c.bf16 %v742_v20, %v742_v20  ;;  %v885_v32 = vpack.c.bf16 %v758_v14, %v758_v14  ;;  %3139 = vmatmul.mubr.bf16.gmra.mrb[4].mxu0 %v2789_v3  ;;  %v889_v17 = vpack.c.bf16 %v774_v41, %v774_v41  ;;  %v893_v9 = vpack.c.bf16 %v790_v46, %v790_v46  ;;  %v4004_v14 = vld [vmem:[#allocation2 + $0xe4] ss:$8 sm:$0xf] }
  0xc8   :  { %v897_v19 = vpack.c.bf16 %v806_v16, %v806_v16  ;;  %v901_v53 = vpack.c.bf16 %v822_v52, %v822_v52  ;;  %v905_v44 = vpack.c.bf16 %v838_v25, %v838_v25  ;;  %v2060_v21 = vunpack.c.l.b16 %v661_v5 }
  0xc9   :  { %v2064_v23 = vunpack.c.l.b16 %v665_v60  ;;  %v2068_v13 = vunpack.c.l.b16 %v669_v1  ;;  %v2072_v26 = vunpack.c.l.b16 %v673_v38  ;;  %v2076_v63 = vunpack.c.l.b16 %v677_v7  ;;  %v3996_v38 = vld [vmem:[#allocation2 + $0xa4] ss:$8 sm:$0xf] }
  0xca   :  { %v2080_v49 = vunpack.c.l.b16 %v681_v6  ;;  %v2084_v27 = vunpack.c.l.b16 %v685_v10  ;;  %v2088_v42 = vunpack.c.l.b16 %v689_v15  ;;  %v2184_v30 = vunpack.c.l.b16 %v877_v22  ;;  %v4000_v15 = vld [vmem:[#allocation2 + $0xc4] ss:$8 sm:$0xf] }
  0xcb   :  { %v2118_v55 = vrot.slane %v2064_v23, 7  ;;  %v2120_v62 = vrot.slane %v2068_v13, 6  ;;  %v2122_v24 = vrot.slane %v2072_v26, 5  ;;  %v2124_v2 = vrot.slane %v2076_v63, 4 }
  0xcc   :  { %v2126_v28 = vrot.slane %v2080_v49, 3  ;;  %v2128_v8 = vrot.slane %v2084_v27, 2  ;;  %v2130_v34 = vrot.slane %v2088_v42, 1  ;;  %v2188_v58 = vunpack.c.l.b16 %v881_v18  ;;  %v4030_v23 = vld [vmem:[#allocation2 + $0x5] ss:$8 sm:$0xf] }
  0xcd   :  { %v2119_v29 = vsel %vm1836_vm0, %v2118_v55, %v2060_v21  ;;  %v2192_v54 = vunpack.c.l.b16 %v885_v32  ;;  %v2196_v56 = vunpack.c.l.b16 %v889_v17  ;;  %v2200_v36 = vunpack.c.l.b16 %v893_v9  ;;  %v4019_v17 = vld [vmem:[#allocation2 + $0x25] ss:$8 sm:$0xf] }
  0xce   :  { %v2121_v12 = vsel %vm1839_vm1, %v2120_v62, %v2119_v29  ;;  %v2204_v43 = vunpack.c.l.b16 %v897_v19  ;;  %v2208_v57 = vunpack.c.l.b16 %v901_v53  ;;  %v2212_v51 = vunpack.c.l.b16 %v905_v44  ;;  %v4021_v9 = vld [vmem:[#allocation2 + $0x45] ss:$8 sm:$0xf] }
  0xcf   :  { %v2123_v50 = vsel %vm1842_vm2, %v2122_v24, %v2121_v12  ;;  %v2242_v61 = vrot.slane %v2188_v58, 7  ;;  %v2244_v60 = vrot.slane %v2192_v54, 6  ;;  %v2246_v1 = vrot.slane %v2196_v56, 5  ;;  %v4032_v13 = vld [vmem:[#allocation2 + $0x65] ss:$8 sm:$0xf] }
  0xd0   :  { %v2125_v5 = vsel %vm1845_vm3, %v2124_v2, %v2123_v50  ;;  %v2248_v40 = vrot.slane %v2200_v36, 4  ;;  %v2250_v39 = vrot.slane %v2204_v43, 3  ;;  %v2252_v10 = vrot.slane %v2208_v57, 2  ;;  %v4035_v42 = vld [vmem:[#allocation2 + $0x85] ss:$8 sm:$0xf] }
  0xd1   :  { %v2127_v7 = vsel %vm1848_vm4, %v2126_v28, %v2125_v5  ;;  %v2243_v6 = vsel %vm1836_vm0, %v2242_v61, %v2184_v30  ;;  %v2254_v20 = vrot.slane %v2212_v51, 1  ;;  %v938_v41 = vrot.slane %v3984_v48, %v3533_v31  ;;  %v4037_v55 = vld [vmem:[#allocation2 + $0xa5] ss:$8 sm:$0xf] }
  0xd2   :  { %v2129_v47 = vsel %vm1851_vm5, %v2128_v8, %v2127_v7  ;;  %v2245_v11 = vsel %vm1839_vm1, %v2244_v60, %v2243_v6  ;;  %v954_v52 = vrot.slane %v3986_v59, %v3533_v31  ;;  %v970_v25 = vrot.slane %v3988_v45, %v3533_v31  ;;  %v4040_v28 = vld [vmem:[#allocation2 + $0xc5] ss:$8 sm:$0xf] }
  0xd3   :  { %v2131_v46 = vsel %vm1854_vm6, %v2130_v34, %v2129_v47  ;;  %v2247_v16 = vsel %vm1842_vm2, %v2246_v1, %v2245_v11  ;;  %v986_v18 = vrot.slane %v3991_v0, %v3533_v31  ;;  %v1002_v32 = vrot.slane %v3993_v4, %v3533_v31  ;;  %v4042_v8 = vld [vmem:[#allocation2 + $0xe5] ss:$8 sm:$0xf] }
  0xd4   :  { %v2148_v3 = vpack.c.b16 %v2131_v46, %v2131_v46  ;;  %v2249_v22 = vsel %vm1845_vm3, %v2248_v40, %v2247_v16  ;;  %v1018_v53 = vrot.slane %v3996_v38, %v3533_v31  ;;  %v1034_v44 = vrot.slane %v4000_v15, %v3533_v31 }
  0xd5   :  { %v2251_v19 = vsel %vm1848_vm4, %v2250_v39, %v2249_v22  ;;  %v1050_v21 = vrot.slane %v4004_v14, %v3533_v31  ;;  %v1092_v63 = vpack.c.bf16 %v938_v41, %v938_v41  ;;  %v1096_v49 = vpack.c.bf16 %v954_v52, %v954_v52 }
  0xd6   :  { %v2253_v26 = vsel %vm1851_vm5, %v2252_v10, %v2251_v19  ;;  %v1100_v27 = vpack.c.bf16 %v970_v25, %v970_v25  ;;  %v1104_v30 = vpack.c.bf16 %v986_v18, %v986_v18  ;;  %v1108_v24 = vpack.c.bf16 %v1002_v32, %v1002_v32 }
  0xd7   :  { %v2255_v62 = vsel %vm1854_vm6, %v2254_v20, %v2253_v26  ;;  %v1112_v2 = vpack.c.bf16 %v1018_v53, %v1018_v53  ;;  %v1116_v34 = vpack.c.bf16 %v1034_v44, %v1034_v44  ;;  %v1120_v58 = vpack.c.bf16 %v1050_v21, %v1050_v21 }
  0xd8   :  { %v2272_v29 = vpack.c.b16 %v2255_v62, %v2255_v62  ;;  %v1154_v54 = vrot.slane %v4030_v23, %v3533_v31  ;;  %v1170_v12 = vrot.slane %v4019_v17, %v3533_v31  ;;  %v1186_v56 = vrot.slane %v4021_v9, %v3533_v31 }
  0xd9   :  { %v1202_v36 = vrot.slane %v4032_v13, %v3533_v31  ;;  %v1218_v43 = vrot.slane %v4035_v42, %v3533_v31  ;;  %v1234_v57 = vrot.slane %v4037_v55, %v3533_v31  ;;  %v1250_v51 = vrot.slane %v4040_v28, %v3533_v31 }
  0xda   :  { %v2797_v50 = vsel %vm2770_vm7, %v2148_v3, %v2272_v29  ;;  %v1266_v61 = vrot.slane %v4042_v8, %v3533_v31  ;;  %v1308_v5 = vpack.c.bf16 %v1154_v54, %v1154_v54  ;;  %v1312_v60 = vpack.c.bf16 %v1170_v12, %v1170_v12 }
  0xdb   :  { %3204 = vmatmul.mubr.bf16.gmra.mrb[4].mxu1 %v2797_v50  ;;  %v1316_v1 = vpack.c.bf16 %v1186_v56, %v1186_v56  ;;  %v1320_v40 = vpack.c.bf16 %v1202_v36, %v1202_v36  ;;  %v1324_v7 = vpack.c.bf16 %v1218_v43, %v1218_v43  ;;  %v1328_v6 = vpack.c.bf16 %v1234_v57, %v1234_v57 }
  0xdc   :  { %v1332_v39 = vpack.c.bf16 %v1250_v51, %v1250_v51  ;;  %v1336_v10 = vpack.c.bf16 %v1266_v61, %v1266_v61  ;;  %v2307_v47 = vunpack.c.l.b16 %v1092_v63  ;;  %v2311_v11 = vunpack.c.l.b16 %v1096_v49 }
  0xdd   :  { %v2315_v20 = vunpack.c.l.b16 %v1100_v27  ;;  %v2319_v41 = vunpack.c.l.b16 %v1104_v30  ;;  %v2323_v46 = vunpack.c.l.b16 %v1108_v24  ;;  %v2327_v16 = vunpack.c.l.b16 %v1112_v2 }
  0xde   :  { %v2331_v52 = vunpack.c.l.b16 %v1116_v34  ;;  %v2335_v25 = vunpack.c.l.b16 %v1120_v58  ;;  %v2352_v3 = vrot.slane %v2311_v11, 7  ;;  %v2431_v32 = vunpack.c.l.b16 %v1308_v5 }
  0xdf   :  { %v2354_v22 = vrot.slane %v2315_v20, 6  ;;  %v2356_v18 = vrot.slane %v2319_v41, 5  ;;  %v2358_v19 = vrot.slane %v2323_v46, 4  ;;  %v2360_v53 = vrot.slane %v2327_v16, 3 }
  0xe0   :  { %v2362_v44 = vrot.slane %v2331_v52, 2  ;;  %v2364_v21 = vrot.slane %v2335_v25, 1  ;;  %v2353_v26 = vsel %vm1836_vm0, %v2352_v3, %v2307_v47  ;;  %v2435_v62 = vunpack.c.l.b16 %v1312_v60 }
  0xe1   :  { %v2439_v29 = vunpack.c.l.b16 %v1316_v1  ;;  %v2443_v63 = vunpack.c.l.b16 %v1320_v40  ;;  %v2355_v49 = vsel %vm1839_vm1, %v2354_v22, %v2353_v26  ;;  %v2447_v27 = vunpack.c.l.b16 %v1324_v7 }
  0xe2   :  { %v2451_v30 = vunpack.c.l.b16 %v1328_v6  ;;  %v2455_v24 = vunpack.c.l.b16 %v1332_v39  ;;  %v2357_v2 = vsel %vm1842_vm2, %v2356_v18, %v2355_v49  ;;  %v2459_v34 = vunpack.c.l.b16 %v1336_v10 }
  0xe3   :  { %v2476_v58 = vrot.slane %v2435_v62, 7  ;;  %v2478_v54 = vrot.slane %v2439_v29, 6  ;;  %v2359_v12 = vsel %vm1845_vm3, %v2358_v19, %v2357_v2  ;;  %v2480_v56 = vrot.slane %v2443_v63, 5 }
  0xe4   :  { %v2482_v36 = vrot.slane %v2447_v27, 4  ;;  %v2484_v43 = vrot.slane %v2451_v30, 3  ;;  %v2361_v50 = vsel %vm1848_vm4, %v2360_v53, %v2359_v12  ;;  %v2486_v51 = vrot.slane %v2455_v24, 2 }
  0xe5   :  { %v2477_v57 = vsel %vm1836_vm0, %v2476_v58, %v2431_v32  ;;  %v2488_v61 = vrot.slane %v2459_v34, 1  ;;  %v2363_v5 = vsel %vm1851_vm5, %v2362_v44, %v2361_v50  ;;  %v946_v1 = vrot.slane %v3984_v48, %v3535_v33 }
  0xe6   :  { %v2479_v60 = vsel %vm1839_vm1, %v2478_v54, %v2477_v57  ;;  %v962_v40 = vrot.slane %v3986_v59, %v3535_v33  ;;  %v2365_v7 = vsel %vm1854_vm6, %v2364_v21, %v2363_v5  ;;  %v978_v39 = vrot.slane %v3988_v45, %v3535_v33 }
  0xe7   :  { %v2481_v6 = vsel %vm1842_vm2, %v2480_v56, %v2479_v60  ;;  %v994_v10 = vrot.slane %v3991_v0, %v3535_v33  ;;  %v2395_v47 = vpack.c.b16 %v2365_v7, %v2365_v7  ;;  %v1010_v20 = vrot.slane %v3993_v4, %v3535_v33 }
  0xe8   :  { %v2483_v11 = vsel %vm1845_vm3, %v2482_v36, %v2481_v6  ;;  %v1026_v41 = vrot.slane %v3996_v38, %v3535_v33  ;;  %v1042_v16 = vrot.slane %v4000_v15, %v3535_v33  ;;  %v1058_v52 = vrot.slane %v4004_v14, %v3535_v33 }
  0xe9   :  { %v2485_v46 = vsel %vm1848_vm4, %v2484_v43, %v2483_v11  ;;  %v1094_v25 = vpack.c.bf16 %v946_v1, %v946_v1  ;;  %v1098_v22 = vpack.c.bf16 %v962_v40, %v962_v40  ;;  %v1102_v18 = vpack.c.bf16 %v978_v39, %v978_v39 }
  0xea   :  { %v2487_v3 = vsel %vm1851_vm5, %v2486_v51, %v2485_v46  ;;  %v1106_v32 = vpack.c.bf16 %v994_v10, %v994_v10  ;;  %v1110_v53 = vpack.c.bf16 %v1010_v20, %v1010_v20  ;;  %v1114_v44 = vpack.c.bf16 %v1026_v41, %v1026_v41 }
  0xeb   :  { %v2489_v19 = vsel %vm1854_vm6, %v2488_v61, %v2487_v3  ;;  %v1118_v21 = vpack.c.bf16 %v1042_v16, %v1042_v16  ;;  %v1122_v62 = vpack.c.bf16 %v1058_v52, %v1058_v52  ;;  %v1162_v29 = vrot.slane %v4030_v23, %v3535_v33 }
  0xec   :  { %v2519_v26 = vpack.c.b16 %v2489_v19, %v2489_v19  ;;  %v1178_v63 = vrot.slane %v4019_v17, %v3535_v33  ;;  %v1194_v49 = vrot.slane %v4021_v9, %v3535_v33  ;;  %v1210_v27 = vrot.slane %v4032_v13, %v3535_v33 }
  0xed   :  { %v1226_v30 = vrot.slane %v4035_v42, %v3535_v33  ;;  %v1242_v24 = vrot.slane %v4037_v55, %v3535_v33  ;;  %v1258_v34 = vrot.slane %v4040_v28, %v3535_v33  ;;  %v1274_v58 = vrot.slane %v4042_v8, %v3535_v33 }
  0xee   :  { %v2809_v2 = vsel %vm2770_vm7, %v2395_v47, %v2519_v26  ;;  %v1310_v54 = vpack.c.bf16 %v1162_v29, %v1162_v29  ;;  %v1314_v12 = vpack.c.bf16 %v1178_v63, %v1178_v63  ;;  %v1318_v56 = vpack.c.bf16 %v1194_v49, %v1194_v49 }
  0xef   :  { %3146 = vmatprep.mubr.bf16.mxu0 %v2809_v2  ;;  %v1322_v36 = vpack.c.bf16 %v1210_v27, %v1210_v27  ;;  %v1326_v43 = vpack.c.bf16 %v1226_v30, %v1226_v30  ;;  %v1330_v50 = vpack.c.bf16 %v1242_v24, %v1242_v24  ;;  %v1334_v57 = vpack.c.bf16 %v1258_v34, %v1258_v34 }
  0xf0   :  { %v1338_v51 = vpack.c.bf16 %v1274_v58, %v1274_v58  ;;  %v2309_v61 = vunpack.c.l.b16 %v1094_v25  ;;  %v2313_v5 = vunpack.c.l.b16 %v1098_v22  ;;  %v2317_v60 = vunpack.c.l.b16 %v1102_v18 }
  0xf1   :  { %v2321_v1 = vunpack.c.l.b16 %v1106_v32  ;;  %v2325_v40 = vunpack.c.l.b16 %v1110_v53  ;;  %v2329_v7 = vunpack.c.l.b16 %v1114_v44  ;;  %v2333_v6 = vunpack.c.l.b16 %v1118_v21 }
  0xf2   :  { %v2337_v39 = vunpack.c.l.b16 %v1122_v62  ;;  %v2433_v10 = vunpack.c.l.b16 %v1310_v54  ;;  %v2380_v47 = vrot.slane %v2313_v5, 7  ;;  %v2382_v11 = vrot.slane %v2317_v60, 6 }
  0xf3   :  { %v2384_v20 = vrot.slane %v2321_v1, 5  ;;  %v2386_v41 = vrot.slane %v2325_v40, 4  ;;  %v2388_v46 = vrot.slane %v2329_v7, 3  ;;  %v2390_v16 = vrot.slane %v2333_v6, 2 }
  0xf4   :  { %v2392_v52 = vrot.slane %v2337_v39, 1  ;;  %v2437_v3 = vunpack.c.l.b16 %v1314_v12  ;;  %v2381_v19 = vsel %vm1836_vm0, %v2380_v47, %v2309_v61  ;;  %v2441_v26 = vunpack.c.l.b16 %v1318_v56 }
  0xf5   :  { %v2445_v25 = vunpack.c.l.b16 %v1322_v36  ;;  %v2449_v22 = vunpack.c.l.b16 %v1326_v43  ;;  %v2383_v18 = vsel %vm1839_vm1, %v2382_v11, %v2381_v19  ;;  %v2453_v32 = vunpack.c.l.b16 %v1330_v50 }
  0xf6   :  { %v2457_v53 = vunpack.c.l.b16 %v1334_v57  ;;  %v2461_v44 = vunpack.c.l.b16 %v1338_v51  ;;  %v2385_v21 = vsel %vm1842_vm2, %v2384_v20, %v2383_v18  ;;  %v2504_v62 = vrot.slane %v2437_v3, 7 }
  0xf7   :  { %v2506_v29 = vrot.slane %v2441_v26, 6  ;;  %v2508_v63 = vrot.slane %v2445_v25, 5  ;;  %v2387_v49 = vsel %vm1845_vm3, %v2386_v41, %v2385_v21  ;;  %v2510_v27 = vrot.slane %v2449_v22, 4 }
  0xf8   :  { %v2512_v30 = vrot.slane %v2453_v32, 3  ;;  %v2514_v24 = vrot.slane %v2457_v53, 2  ;;  %v2389_v2 = vsel %vm1848_vm4, %v2388_v46, %v2387_v49  ;;  %v2505_v34 = vsel %vm1836_vm0, %v2504_v62, %v2433_v10 }
  0xf9   :  { %v2516_v58 = vrot.slane %v2461_v44, 1  ;;  %v934_v54 = vrot.slane %v3984_v48, %v3537_v35  ;;  %v2391_v12 = vsel %vm1851_vm5, %v2390_v16, %v2389_v2  ;;  %v2507_v56 = vsel %vm1839_vm1, %v2506_v29, %v2505_v34 }
  0xfa   :  { %v950_v36 = vrot.slane %v3986_v59, %v3537_v35  ;;  %v966_v43 = vrot.slane %v3988_v45, %v3537_v35  ;;  %v2393_v50 = vsel %vm1854_vm6, %v2392_v52, %v2391_v12  ;;  %v2509_v57 = vsel %vm1842_vm2, %v2508_v63, %v2507_v56 }
  0xfb   :  { %v982_v51 = vrot.slane %v3991_v0, %v3537_v35  ;;  %v998_v61 = vrot.slane %v3993_v4, %v3537_v35  ;;  %v2397_v5 = vpack.c.b16 %v2393_v50, %v2393_v50  ;;  %v2511_v60 = vsel %vm1845_vm3, %v2510_v27, %v2509_v57 }
  0xfc   :  { %v1014_v1 = vrot.slane %v3996_v38, %v3537_v35  ;;  %v1030_v40 = vrot.slane %v4000_v15, %v3537_v35  ;;  %v2513_v7 = vsel %vm1848_vm4, %v2512_v30, %v2511_v60  ;;  %v1046_v6 = vrot.slane %v4004_v14, %v3537_v35 }
  0xfd   :  { %v1091_v39 = vpack.c.bf16 %v934_v54, %v934_v54  ;;  %v1095_v10 = vpack.c.bf16 %v950_v36, %v950_v36  ;;  %v2515_v47 = vsel %vm1851_vm5, %v2514_v24, %v2513_v7  ;;  %v1099_v11 = vpack.c.bf16 %v966_v43, %v966_v43 }
  0xfe   :  { %v1103_v20 = vpack.c.bf16 %v982_v51, %v982_v51  ;;  %v1107_v41 = vpack.c.bf16 %v998_v61, %v998_v61  ;;  %v2517_v46 = vsel %vm1854_vm6, %v2516_v58, %v2515_v47  ;;  %v1111_v16 = vpack.c.bf16 %v1014_v1, %v1014_v1 }
  0xff   :  { %v1115_v52 = vpack.c.bf16 %v1030_v40, %v1030_v40  ;;  %v1119_v3 = vpack.c.bf16 %v1046_v6, %v1046_v6  ;;  %v2521_v19 = vpack.c.b16 %v2517_v46, %v2517_v46  ;;  %v1150_v26 = vrot.slane %v4030_v23, %v3537_v35 }
 0x100   :  { %v1166_v25 = vrot.slane %v4019_v17, %v3537_v35  ;;  %v1182_v22 = vrot.slane %v4021_v9, %v3537_v35  ;;  %v1198_v18 = vrot.slane %v4032_v13, %v3537_v35  ;;  %v1214_v32 = vrot.slane %v4035_v42, %v3537_v35 }
 0x101   :  { %v1230_v53 = vrot.slane %v4037_v55, %v3537_v35  ;;  %v1246_v44 = vrot.slane %v4040_v28, %v3537_v35  ;;  %v2817_v21 = vsel %vm2770_vm7, %v2397_v5, %v2521_v19  ;;  %v1262_v62 = vrot.slane %v4042_v8, %v3537_v35 }
 0x102   :  { %v1307_v29 = vpack.c.bf16 %v1150_v26, %v1150_v26  ;;  %v1311_v63 = vpack.c.bf16 %v1166_v25, %v1166_v25  ;;  %3211 = vmatprep.mubr.bf16.mxu1 %v2817_v21  ;;  %v1315_v49 = vpack.c.bf16 %v1182_v22, %v1182_v22  ;;  %v1319_v27 = vpack.c.bf16 %v1198_v18, %v1198_v18 }
 0x103   :  { %v1323_v30 = vpack.c.bf16 %v1214_v32, %v1214_v32  ;;  %v1327_v24 = vpack.c.bf16 %v1230_v53, %v1230_v53  ;;  %v1331_v2 = vpack.c.bf16 %v1246_v44, %v1246_v44  ;;  %v1335_v34 = vpack.c.bf16 %v1262_v62, %v1262_v62 }
 0x104   :  { %v2306_v58 = vunpack.c.l.b16 %v1091_v39  ;;  %v2310_v54 = vunpack.c.l.b16 %v1095_v10  ;;  %v2314_v12 = vunpack.c.l.b16 %v1099_v11  ;;  %v2318_v56 = vunpack.c.l.b16 %v1103_v20 }
 0x105   :  { %v2322_v36 = vunpack.c.l.b16 %v1107_v41  ;;  %v2326_v43 = vunpack.c.l.b16 %v1111_v16  ;;  %v2330_v50 = vunpack.c.l.b16 %v1115_v52  ;;  %v2334_v57 = vunpack.c.l.b16 %v1119_v3 }
 0x106   :  { %v2338_v51 = vrot.slane %v2310_v54, 7  ;;  %v2430_v61 = vunpack.c.l.b16 %v1307_v29  ;;  %v2340_v5 = vrot.slane %v2314_v12, 6  ;;  %v2342_v60 = vrot.slane %v2318_v56, 5 }
 0x107   :  { %v2344_v1 = vrot.slane %v2322_v36, 4  ;;  %v2346_v40 = vrot.slane %v2326_v43, 3  ;;  %v2348_v6 = vrot.slane %v2330_v50, 2  ;;  %v2350_v47 = vrot.slane %v2334_v57, 1 }
 0x108   :  { %v2339_v7 = vsel %vm1836_vm0, %v2338_v51, %v2306_v58  ;;  %v2434_v46 = vunpack.c.l.b16 %v1311_v63  ;;  %v2438_v10 = vunpack.c.l.b16 %v1315_v49  ;;  %v2442_v11 = vunpack.c.l.b16 %v1319_v27 }
 0x109   :  { %v2341_v39 = vsel %vm1839_vm1, %v2340_v5, %v2339_v7  ;;  %v2446_v20 = vunpack.c.l.b16 %v1323_v30  ;;  %v2450_v16 = vunpack.c.l.b16 %v1327_v24  ;;  %v2454_v52 = vunpack.c.l.b16 %v1331_v2 }
 0x10a   :  { %v2343_v41 = vsel %vm1842_vm2, %v2342_v60, %v2341_v39  ;;  %v2458_v3 = vunpack.c.l.b16 %v1335_v34  ;;  %v2462_v26 = vrot.slane %v2434_v46, 7  ;;  %v2464_v25 = vrot.slane %v2438_v10, 6 }
 0x10b   :  { %v2345_v19 = vsel %vm1845_vm3, %v2344_v1, %v2343_v41  ;;  %v2466_v22 = vrot.slane %v2442_v11, 5  ;;  %v2468_v32 = vrot.slane %v2446_v20, 4  ;;  %v2470_v53 = vrot.slane %v2450_v16, 3 }
 0x10c   :  { %v2347_v18 = vsel %vm1848_vm4, %v2346_v40, %v2345_v19  ;;  %v2472_v44 = vrot.slane %v2454_v52, 2  ;;  %v2463_v62 = vsel %vm1836_vm0, %v2462_v26, %v2430_v61  ;;  %v2474_v29 = vrot.slane %v2458_v3, 1 }
 0x10d   :  { %v2349_v21 = vsel %vm1851_vm5, %v2348_v6, %v2347_v18  ;;  %v942_v63 = vrot.slane %v3984_v48, %v3539_v37  ;;  %v2465_v27 = vsel %vm1839_vm1, %v2464_v25, %v2463_v62  ;;  %v958_v30 = vrot.slane %v3986_v59, %v3539_v37 }
 0x10e   :  { %v2351_v49 = vsel %vm1854_vm6, %v2350_v47, %v2349_v21  ;;  %v974_v24 = vrot.slane %v3988_v45, %v3539_v37  ;;  %v2467_v34 = vsel %vm1842_vm2, %v2466_v22, %v2465_v27  ;;  %v990_v58 = vrot.slane %v3991_v0, %v3539_v37 }
 0x10f   :  { %v2394_v2 = vpack.c.b16 %v2351_v49, %v2351_v49  ;;  %v1006_v54 = vrot.slane %v3993_v4, %v3539_v37  ;;  %v2469_v48 = vsel %vm1845_vm3, %v2468_v32, %v2467_v34  ;;  %v1022_v12 = vrot.slane %v3996_v38, %v3539_v37  ;;  %v4206_v34 = vld [vmem:[#allocation2 + $0x26] ss:$8 sm:$0xf] }
 0x110   :  { %v1038_v59 = vrot.slane %v4000_v15, %v3539_v37  ;;  %v1054_v45 = vrot.slane %v4004_v14, %v3539_v37  ;;  %v2471_v56 = vsel %vm1848_vm4, %v2470_v53, %v2469_v48  ;;  %v1093_v36 = vpack.c.bf16 %v942_v63, %v942_v63 }
 0x111   :  { %v1097_v43 = vpack.c.bf16 %v958_v30, %v958_v30  ;;  %v1101_v50 = vpack.c.bf16 %v974_v24, %v974_v24  ;;  %v2473_v0 = vsel %vm1851_vm5, %v2472_v44, %v2471_v56  ;;  %v1105_v57 = vpack.c.bf16 %v990_v58, %v990_v58  ;;  %v4208_v58 = vld [vmem:[#allocation2 + $0x46] ss:$8 sm:$0xf] }
 0x112   :  { %v1109_v4 = vpack.c.bf16 %v1006_v54, %v1006_v54  ;;  %v1113_v51 = vpack.c.bf16 %v1022_v12, %v1022_v12  ;;  %v2475_v61 = vsel %vm1854_vm6, %v2474_v29, %v2473_v0  ;;  %v1117_v5 = vpack.c.bf16 %v1038_v59, %v1038_v59  ;;  %v4213_v56 = vld [vmem:[#allocation2 + $0x86] ss:$8 sm:$0xf] }
 0x113   :  { %v1121_v38 = vpack.c.bf16 %v1054_v45, %v1054_v45  ;;  %v1158_v15 = vrot.slane %v4030_v23, %v3539_v37  ;;  %v2518_v60 = vpack.c.b16 %v2475_v61, %v2475_v61  ;;  %v1174_v14 = vrot.slane %v4019_v17, %v3539_v37  ;;  %v4211_v45 = vld [vmem:[#allocation2 + $0x66] ss:$8 sm:$0xf] }
 0x114   :  { %v1190_v1 = vrot.slane %v4021_v9, %v3539_v37  ;;  %v1206_v40 = vrot.slane %v4032_v13, %v3539_v37  ;;  %v1222_v7 = vrot.slane %v4035_v42, %v3539_v37  ;;  %v1238_v6 = vrot.slane %v4037_v55, %v3539_v37 }
 0x115   :  { %v1254_v47 = vrot.slane %v4040_v28, %v3539_v37  ;;  %v1270_v23 = vrot.slane %v4042_v8, %v3539_v37  ;;  %v2805_v17 = vsel %vm2770_vm7, %v2394_v2, %v2518_v60  ;;  %v1309_v46 = vpack.c.bf16 %v1158_v15, %v1158_v15  ;;  %v4204_v2 = vld [vmem:[#allocation2 + $0x6] ss:$8 sm:$0xf] }
 0x116   :  { %v1313_v39 = vpack.c.bf16 %v1174_v14, %v1174_v14  ;;  %v1317_v9 = vpack.c.bf16 %v1190_v1, %v1190_v1  ;;  %3147 = vmatmul.mubr.bf16.gmra.mrb[8].mxu0 %v2805_v17  ;;  %v1321_v10 = vpack.c.bf16 %v1206_v40, %v1206_v40  ;;  %v1325_v13 = vpack.c.bf16 %v1222_v7, %v1222_v7  ;;  %v4224_v1 = vld [vmem:[#allocation2 + $0xe6] ss:$8 sm:$0xf] }
 0x117   :  { %v1329_v11 = vpack.c.bf16 %v1238_v6, %v1238_v6  ;;  %v1333_v20 = vpack.c.bf16 %v1254_v47, %v1254_v47  ;;  %v1337_v42 = vpack.c.bf16 %v1270_v23, %v1270_v23  ;;  %v2308_v41 = vunpack.c.l.b16 %v1093_v36 }
 0x118   :  { %v2312_v16 = vunpack.c.l.b16 %v1097_v43  ;;  %v2316_v55 = vunpack.c.l.b16 %v1101_v50  ;;  %v2320_v52 = vunpack.c.l.b16 %v1105_v57  ;;  %v2324_v3 = vunpack.c.l.b16 %v1109_v4  ;;  %v4216_v57 = vld [vmem:[#allocation2 + $0xa6] ss:$8 sm:$0xf] }
 0x119   :  { %v2328_v28 = vunpack.c.l.b16 %v1113_v51  ;;  %v2332_v19 = vunpack.c.l.b16 %v1117_v5  ;;  %v2336_v26 = vunpack.c.l.b16 %v1121_v38  ;;  %v2432_v22 = vunpack.c.l.b16 %v1309_v46  ;;  %v4220_v38 = vld [vmem:[#allocation2 + $0xc6] ss:$8 sm:$0xf] }
 0x11a   :  { %v2366_v8 = vrot.slane %v2312_v16, 7  ;;  %v2368_v25 = vrot.slane %v2316_v55, 6  ;;  %v2370_v18 = vrot.slane %v2320_v52, 5  ;;  %v2372_v32 = vrot.slane %v2324_v3, 4 }
 0x11b   :  { %v2374_v53 = vrot.slane %v2328_v28, 3  ;;  %v2376_v44 = vrot.slane %v2332_v19, 2  ;;  %v2378_v62 = vrot.slane %v2336_v26, 1  ;;  %v2436_v29 = vunpack.c.l.b16 %v1313_v39  ;;  %v4250_v16 = vld [vmem:[#allocation2 + $0x7] ss:$8 sm:$0xf] }
 0x11c   :  { %v2367_v21 = vsel %vm1836_vm0, %v2366_v8, %v2308_v41  ;;  %v2440_v63 = vunpack.c.l.b16 %v1317_v9  ;;  %v2444_v27 = vunpack.c.l.b16 %v1321_v10  ;;  %v2448_v30 = vunpack.c.l.b16 %v1325_v13  ;;  %v4239_v10 = vld [vmem:[#allocation2 + $0x27] ss:$8 sm:$0xf] }
 0x11d   :  { %v2369_v49 = vsel %vm1839_vm1, %v2368_v25, %v2367_v21  ;;  %v2452_v24 = vunpack.c.l.b16 %v1329_v11  ;;  %v2456_v48 = vunpack.c.l.b16 %v1333_v20  ;;  %v2460_v12 = vunpack.c.l.b16 %v1337_v42  ;;  %v4241_v13 = vld [vmem:[#allocation2 + $0x47] ss:$8 sm:$0xf] }
 0x11e   :  { %v2371_v54 = vsel %vm1842_vm2, %v2370_v18, %v2369_v49  ;;  %v2490_v59 = vrot.slane %v2436_v29, 7  ;;  %v2492_v43 = vrot.slane %v2440_v63, 6  ;;  %v2494_v50 = vrot.slane %v2444_v27, 5  ;;  %v4252_v55 = vld [vmem:[#allocation2 + $0x67] ss:$8 sm:$0xf] }
 0x11f   :  { %v2373_v36 = vsel %vm1845_vm3, %v2372_v32, %v2371_v54  ;;  %v2496_v0 = vrot.slane %v2448_v30, 4  ;;  %v2498_v61 = vrot.slane %v2452_v24, 3  ;;  %v2500_v5 = vrot.slane %v2456_v48, 2  ;;  %v4255_v26 = vld [vmem:[#allocation2 + $0x87] ss:$8 sm:$0xf] }
 0x120   :  { %v2375_v4 = vsel %vm1848_vm4, %v2374_v53, %v2373_v36  ;;  %v2491_v51 = vsel %vm1836_vm0, %v2490_v59, %v2432_v22  ;;  %v2502_v14 = vrot.slane %v2460_v12, 1  ;;  %v1370_v40 = vrot.slane %v4204_v2, %v3533_v31  ;;  %v4257_v8 = vld [vmem:[#allocation2 + $0xa7] ss:$8 sm:$0xf] }
 0x121   :  { %v2377_v15 = vsel %vm1851_vm5, %v2376_v44, %v2375_v4  ;;  %v2493_v60 = vsel %vm1839_vm1, %v2492_v43, %v2491_v51  ;;  %v1386_v47 = vrot.slane %v4206_v34, %v3533_v31  ;;  %v1402_v23 = vrot.slane %v4208_v58, %v3533_v31  ;;  %v4260_v53 = vld [vmem:[#allocation2 + $0xc7] ss:$8 sm:$0xf] }
 0x122   :  { %v2379_v7 = vsel %vm1854_vm6, %v2378_v62, %v2377_v15  ;;  %v2495_v6 = vsel %vm1842_vm2, %v2494_v50, %v2493_v60  ;;  %v1418_v39 = vrot.slane %v4211_v45, %v3533_v31  ;;  %v1434_v9 = vrot.slane %v4213_v56, %v3533_v31  ;;  %v4262_v44 = vld [vmem:[#allocation2 + $0xe7] ss:$8 sm:$0xf] }
 0x123   :  { %v2396_v17 = vpack.c.b16 %v2379_v7, %v2379_v7  ;;  %v2497_v46 = vsel %vm1845_vm3, %v2496_v0, %v2495_v6  ;;  %v1450_v20 = vrot.slane %v4216_v57, %v3533_v31  ;;  %v1466_v42 = vrot.slane %v4220_v38, %v3533_v31 }
 0x124   :  { %v2499_v11 = vsel %vm1848_vm4, %v2498_v61, %v2497_v46  ;;  %v1482_v41 = vrot.slane %v4224_v1, %v3533_v31  ;;  %v1524_v3 = vpack.c.bf16 %v1370_v40, %v1370_v40  ;;  %v1528_v28 = vpack.c.bf16 %v1386_v47, %v1386_v47 }
 0x125   :  { %v2501_v52 = vsel %vm1851_vm5, %v2500_v5, %v2499_v11  ;;  %v1532_v19 = vpack.c.bf16 %v1402_v23, %v1402_v23  ;;  %v1536_v22 = vpack.c.bf16 %v1418_v39, %v1418_v39  ;;  %v1540_v18 = vpack.c.bf16 %v1434_v9, %v1434_v9 }
 0x126   :  { %v2503_v25 = vsel %vm1854_vm6, %v2502_v14, %v2501_v52  ;;  %v1544_v32 = vpack.c.bf16 %v1450_v20, %v1450_v20  ;;  %v1548_v62 = vpack.c.bf16 %v1466_v42, %v1466_v42  ;;  %v1552_v29 = vpack.c.bf16 %v1482_v41, %v1482_v41 }
 0x127   :  { %v2520_v21 = vpack.c.b16 %v2503_v25, %v2503_v25  ;;  %v1586_v63 = vrot.slane %v4250_v16, %v3533_v31  ;;  %v1602_v49 = vrot.slane %v4239_v10, %v3533_v31  ;;  %v1618_v27 = vrot.slane %v4241_v13, %v3533_v31 }
 0x128   :  { %v1634_v30 = vrot.slane %v4252_v55, %v3533_v31  ;;  %v1650_v24 = vrot.slane %v4255_v26, %v3533_v31  ;;  %v1666_v48 = vrot.slane %v4257_v8, %v3533_v31  ;;  %v1682_v12 = vrot.slane %v4260_v53, %v3533_v31 }
 0x129   :  { %v2813_v54 = vsel %vm2770_vm7, %v2396_v17, %v2520_v21  ;;  %v1698_v59 = vrot.slane %v4262_v44, %v3533_v31  ;;  %v1740_v36 = vpack.c.bf16 %v1586_v63, %v1586_v63  ;;  %v1744_v43 = vpack.c.bf16 %v1602_v49, %v1602_v49 }
 0x12a   :  { %3212 = vmatmul.mubr.bf16.gmra.mrb[8].mxu1 %v2813_v54  ;;  %v1748_v50 = vpack.c.bf16 %v1618_v27, %v1618_v27  ;;  %v1752_v0 = vpack.c.bf16 %v1634_v30, %v1634_v30  ;;  %v1756_v4 = vpack.c.bf16 %v1650_v24, %v1650_v24  ;;  %v1760_v51 = vpack.c.bf16 %v1666_v48, %v1666_v48 }
 0x12b   :  { %v1764_v61 = vpack.c.bf16 %v1682_v12, %v1682_v12  ;;  %v1768_v5 = vpack.c.bf16 %v1698_v59, %v1698_v59  ;;  %v2555_v15 = vunpack.c.l.b16 %v1524_v3  ;;  %v2559_v60 = vunpack.c.l.b16 %v1528_v28 }
 0x12c   :  { %v2563_v14 = vunpack.c.l.b16 %v1532_v19  ;;  %v2567_v40 = vunpack.c.l.b16 %v1536_v22  ;;  %v2571_v7 = vunpack.c.l.b16 %v1540_v18  ;;  %v2575_v6 = vunpack.c.l.b16 %v1544_v32 }
 0x12d   :  { %v2579_v47 = vunpack.c.l.b16 %v1548_v62  ;;  %v2583_v23 = vunpack.c.l.b16 %v1552_v29  ;;  %v2600_v17 = vrot.slane %v2559_v60, 7  ;;  %v2679_v39 = vunpack.c.l.b16 %v1740_v36 }
 0x12e   :  { %v2602_v46 = vrot.slane %v2563_v14, 6  ;;  %v2604_v31 = vrot.slane %v2567_v40, 5  ;;  %v2606_v9 = vrot.slane %v2571_v7, 4  ;;  %v2608_v11 = vrot.slane %v2575_v6, 3 }
 0x12f   :  { %v2610_v20 = vrot.slane %v2579_v47, 2  ;;  %v2612_v42 = vrot.slane %v2583_v23, 1  ;;  %v2601_v41 = vsel %vm1836_vm0, %v2600_v17, %v2555_v15  ;;  %v2683_v52 = vunpack.c.l.b16 %v1744_v43 }
 0x130   :  { %v2687_v25 = vunpack.c.l.b16 %v1748_v50  ;;  %v2691_v3 = vunpack.c.l.b16 %v1752_v0  ;;  %v2603_v28 = vsel %vm1839_vm1, %v2602_v46, %v2601_v41  ;;  %v2695_v19 = vunpack.c.l.b16 %v1756_v4 }
 0x131   :  { %v2699_v22 = vunpack.c.l.b16 %v1760_v51  ;;  %v2703_v18 = vunpack.c.l.b16 %v1764_v61  ;;  %v2605_v32 = vsel %vm1842_vm2, %v2604_v31, %v2603_v28  ;;  %v2707_v21 = vunpack.c.l.b16 %v1768_v5 }
 0x132   :  { %v2724_v62 = vrot.slane %v2683_v52, 7  ;;  %v2726_v29 = vrot.slane %v2687_v25, 6  ;;  %v2607_v63 = vsel %vm1845_vm3, %v2606_v9, %v2605_v32  ;;  %v2728_v49 = vrot.slane %v2691_v3, 5 }
 0x133   :  { %v2730_v27 = vrot.slane %v2695_v19, 4  ;;  %v2732_v30 = vrot.slane %v2699_v22, 3  ;;  %v2609_v24 = vsel %vm1848_vm4, %v2608_v11, %v2607_v63  ;;  %v2734_v48 = vrot.slane %v2703_v18, 2 }
 0x134   :  { %v2725_v54 = vsel %vm1836_vm0, %v2724_v62, %v2679_v39  ;;  %v2736_v12 = vrot.slane %v2707_v21, 1  ;;  %v2611_v59 = vsel %vm1851_vm5, %v2610_v20, %v2609_v24  ;;  %v1378_v43 = vrot.slane %v4204_v2, %v3535_v33 }
 0x135   :  { %v2727_v36 = vsel %vm1839_vm1, %v2726_v29, %v2725_v54  ;;  %v1394_v50 = vrot.slane %v4206_v34, %v3535_v33  ;;  %v2613_v0 = vsel %vm1854_vm6, %v2612_v42, %v2611_v59  ;;  %v1410_v51 = vrot.slane %v4208_v58, %v3535_v33 }
 0x136   :  { %v2729_v4 = vsel %vm1842_vm2, %v2728_v49, %v2727_v36  ;;  %v1426_v61 = vrot.slane %v4211_v45, %v3535_v33  ;;  %v2643_v5 = vpack.c.b16 %v2613_v0, %v2613_v0  ;;  %v1442_v60 = vrot.slane %v4213_v56, %v3535_v33 }
 0x137   :  { %v2731_v15 = vsel %vm1845_vm3, %v2730_v27, %v2729_v4  ;;  %v1458_v14 = vrot.slane %v4216_v57, %v3535_v33  ;;  %v1474_v7 = vrot.slane %v4220_v38, %v3535_v33  ;;  %v1490_v6 = vrot.slane %v4224_v1, %v3535_v33 }
 0x138   :  { %v2733_v40 = vsel %vm1848_vm4, %v2732_v30, %v2731_v15  ;;  %v1526_v47 = vpack.c.bf16 %v1378_v43, %v1378_v43  ;;  %v1530_v17 = vpack.c.bf16 %v1394_v50, %v1394_v50  ;;  %v1534_v46 = vpack.c.bf16 %v1410_v51, %v1410_v51 }
 0x139   :  { %v2735_v23 = vsel %vm1851_vm5, %v2734_v48, %v2733_v40  ;;  %v1538_v31 = vpack.c.bf16 %v1426_v61, %v1426_v61  ;;  %v1542_v9 = vpack.c.bf16 %v1442_v60, %v1442_v60  ;;  %v1546_v11 = vpack.c.bf16 %v1458_v14, %v1458_v14 }
 0x13a   :  { %v2737_v39 = vsel %vm1854_vm6, %v2736_v12, %v2735_v23  ;;  %v1550_v20 = vpack.c.bf16 %v1474_v7, %v1474_v7  ;;  %v1554_v41 = vpack.c.bf16 %v1490_v6, %v1490_v6  ;;  %v1594_v52 = vrot.slane %v4250_v16, %v3535_v33 }
 0x13b   :  { %v2767_v42 = vpack.c.b16 %v2737_v39, %v2737_v39  ;;  %v1610_v25 = vrot.slane %v4239_v10, %v3535_v33  ;;  %v1626_v3 = vrot.slane %v4241_v13, %v3535_v33  ;;  %v1642_v28 = vrot.slane %v4252_v55, %v3535_v33 }
 0x13c   :  { %v1658_v19 = vrot.slane %v4255_v26, %v3535_v33  ;;  %v1674_v22 = vrot.slane %v4257_v8, %v3535_v33  ;;  %v1690_v32 = vrot.slane %v4260_v53, %v3535_v33  ;;  %v1706_v21 = vrot.slane %v4262_v44, %v3535_v33 }
 0x13d   :  { %v2825_v18 = vsel %vm2770_vm7, %v2643_v5, %v2767_v42  ;;  %v1742_v62 = vpack.c.bf16 %v1594_v52, %v1594_v52  ;;  %v1746_v29 = vpack.c.bf16 %v1610_v25, %v1610_v25  ;;  %v1750_v63 = vpack.c.bf16 %v1626_v3, %v1626_v3 }
 0x13e   :  { %3154 = vmatprep.mubr.bf16.mxu0 %v2825_v18  ;;  %v1754_v49 = vpack.c.bf16 %v1642_v28, %v1642_v28  ;;  %v1758_v27 = vpack.c.bf16 %v1658_v19, %v1658_v19  ;;  %v1762_v30 = vpack.c.bf16 %v1674_v22, %v1674_v22  ;;  %v1766_v24 = vpack.c.bf16 %v1690_v32, %v1690_v32 }
 0x13f   :  { %v1770_v54 = vpack.c.bf16 %v1706_v21, %v1706_v21  ;;  %v2557_v48 = vunpack.c.l.b16 %v1526_v47  ;;  %v2561_v12 = vunpack.c.l.b16 %v1530_v17  ;;  %v2565_v59 = vunpack.c.l.b16 %v1534_v46 }
 0x140   :  { %v2569_v36 = vunpack.c.l.b16 %v1538_v31  ;;  %v2573_v43 = vunpack.c.l.b16 %v1542_v9  ;;  %v2577_v50 = vunpack.c.l.b16 %v1546_v11  ;;  %v2581_v0 = vunpack.c.l.b16 %v1550_v20 }
 0x141   :  { %v2585_v4 = vunpack.c.l.b16 %v1554_v41  ;;  %v2681_v51 = vunpack.c.l.b16 %v1742_v62  ;;  %v2628_v61 = vrot.slane %v2561_v12, 7  ;;  %v2630_v33 = vrot.slane %v2565_v59, 6 }
 0x142   :  { %v2632_v5 = vrot.slane %v2569_v36, 5  ;;  %v2634_v15 = vrot.slane %v2573_v43, 4  ;;  %v2636_v60 = vrot.slane %v2577_v50, 3  ;;  %v2638_v14 = vrot.slane %v2581_v0, 2 }
 0x143   :  { %v2640_v40 = vrot.slane %v2585_v4, 1  ;;  %v2685_v7 = vunpack.c.l.b16 %v1746_v29  ;;  %v2629_v6 = vsel %vm1836_vm0, %v2628_v61, %v2557_v48  ;;  %v2689_v23 = vunpack.c.l.b16 %v1750_v63 }
 0x144   :  { %v2693_v47 = vunpack.c.l.b16 %v1754_v49  ;;  %v2697_v17 = vunpack.c.l.b16 %v1758_v27  ;;  %v2631_v46 = vsel %vm1839_vm1, %v2630_v33, %v2629_v6  ;;  %v2701_v31 = vunpack.c.l.b16 %v1762_v30 }
 0x145   :  { %v2705_v39 = vunpack.c.l.b16 %v1766_v24  ;;  %v2709_v9 = vunpack.c.l.b16 %v1770_v54  ;;  %v2633_v11 = vsel %vm1842_vm2, %v2632_v5, %v2631_v46  ;;  %v2752_v20 = vrot.slane %v2685_v7, 7 }
 0x146   :  { %v2754_v42 = vrot.slane %v2689_v23, 6  ;;  %v2756_v41 = vrot.slane %v2693_v47, 5  ;;  %v2635_v52 = vsel %vm1845_vm3, %v2634_v15, %v2633_v11  ;;  %v2758_v25 = vrot.slane %v2697_v17, 4 }
 0x147   :  { %v2760_v3 = vrot.slane %v2701_v31, 3  ;;  %v2762_v28 = vrot.slane %v2705_v39, 2  ;;  %v2637_v19 = vsel %vm1848_vm4, %v2636_v60, %v2635_v52  ;;  %v2753_v22 = vsel %vm1836_vm0, %v2752_v20, %v2681_v51 }
 0x148   :  { %v2764_v18 = vrot.slane %v2709_v9, 1  ;;  %v1366_v32 = vrot.slane %v4204_v2, %v3537_v35  ;;  %v2639_v21 = vsel %vm1851_vm5, %v2638_v14, %v2637_v19  ;;  %v2755_v62 = vsel %vm1839_vm1, %v2754_v42, %v2753_v22 }
 0x149   :  { %v1382_v29 = vrot.slane %v4206_v34, %v3537_v35  ;;  %v1398_v63 = vrot.slane %v4208_v58, %v3537_v35  ;;  %v2641_v49 = vsel %vm1854_vm6, %v2640_v40, %v2639_v21  ;;  %v2757_v27 = vsel %vm1842_vm2, %v2756_v41, %v2755_v62 }
 0x14a   :  { %v1414_v30 = vrot.slane %v4211_v45, %v3537_v35  ;;  %v1430_v24 = vrot.slane %v4213_v56, %v3537_v35  ;;  %v2645_v54 = vpack.c.b16 %v2641_v49, %v2641_v49  ;;  %v2759_v48 = vsel %vm1845_vm3, %v2758_v25, %v2757_v27 }
 0x14b   :  { %v1446_v12 = vrot.slane %v4216_v57, %v3537_v35  ;;  %v1462_v59 = vrot.slane %v4220_v38, %v3537_v35  ;;  %v2761_v36 = vsel %vm1848_vm4, %v2760_v3, %v2759_v48  ;;  %v1478_v43 = vrot.slane %v4224_v1, %v3537_v35  ;;  %v4356_v4 = vpop.f32.mrb[0].mxu0 }
 0x14c   :  { %v1523_v50 = vpack.c.bf16 %v1366_v32, %v1366_v32  ;;  %v1527_v0 = vpack.c.bf16 %v1382_v29, %v1382_v29  ;;  %v2763_v51 = vsel %vm1851_vm5, %v2762_v28, %v2761_v36  ;;  %v1531_v61 = vpack.c.bf16 %v1398_v63, %v1398_v63  ;;  %v4359_v15 = vpop.f32.mrb[1].mxu0 }
 0x14d   :  { %v1535_v33 = vpack.c.bf16 %v1414_v30, %v1414_v30  ;;  %v1539_v5 = vpack.c.bf16 %v1430_v24, %v1430_v24  ;;  %v2765_v60 = vsel %vm1854_vm6, %v2764_v18, %v2763_v51  ;;  %v1543_v14 = vpack.c.bf16 %v1446_v12, %v1446_v12  ;;  %v4362_v6 = vpop.f32.mrb[2].mxu0 }
 0x14e   :  { %v1547_v40 = vpack.c.bf16 %v1462_v59, %v1462_v59  ;;  %v1551_v7 = vpack.c.bf16 %v1478_v43, %v1478_v43  ;;  %v2769_v23 = vpack.c.b16 %v2765_v60, %v2765_v60  ;;  %v1582_v47 = vrot.slane %v4250_v16, %v3537_v35  ;;  %v4370_v31 = vpop.f32.mrb[3].mxu0 }
 0x14f   :  { %v1598_v17 = vrot.slane %v4239_v10, %v3537_v35  ;;  %v1614_v46 = vrot.slane %v4241_v13, %v3537_v35  ;;  %v1630_v39 = vrot.slane %v4252_v55, %v3537_v35  ;;  %v1646_v9 = vrot.slane %v4255_v26, %v3537_v35 }
 0x150   :  { %v1662_v11 = vrot.slane %v4257_v8, %v3537_v35  ;;  %v1678_v20 = vrot.slane %v4260_v53, %v3537_v35  ;;  %v2833_v42 = vsel %vm2770_vm7, %v2645_v54, %v2769_v23  ;;  %v1694_v41 = vrot.slane %v4262_v44, %v3537_v35 }
 0x151   :  { %v1739_v52 = vpack.c.bf16 %v1582_v47, %v1582_v47  ;;  %v1743_v25 = vpack.c.bf16 %v1598_v17, %v1598_v17  ;;  %3219 = vmatprep.mubr.bf16.mxu1 %v2833_v42  ;;  %v1747_v3 = vpack.c.bf16 %v1614_v46, %v1614_v46  ;;  %v1751_v28 = vpack.c.bf16 %v1630_v39, %v1630_v39 }
 0x152   :  { %v1755_v19 = vpack.c.bf16 %v1646_v9, %v1646_v9  ;;  %v1759_v22 = vpack.c.bf16 %v1662_v11, %v1662_v11  ;;  %v1763_v18 = vpack.c.bf16 %v1678_v20, %v1678_v20  ;;  %v1767_v32 = vpack.c.bf16 %v1694_v41, %v1694_v41 }
 0x153   :  { %v2554_v21 = vunpack.c.l.b16 %v1523_v50  ;;  %v2558_v62 = vunpack.c.l.b16 %v1527_v0  ;;  %v2562_v29 = vunpack.c.l.b16 %v1531_v61  ;;  %v2566_v63 = vunpack.c.l.b16 %v1535_v33 }
 0x154   :  { %v2570_v49 = vunpack.c.l.b16 %v1539_v5  ;;  %v2574_v27 = vunpack.c.l.b16 %v1543_v14  ;;  %v2578_v30 = vunpack.c.l.b16 %v1547_v40  ;;  %v2582_v24 = vunpack.c.l.b16 %v1551_v7 }
 0x155   :  { %v2586_v54 = vrot.slane %v2558_v62, 7  ;;  %v2678_v48 = vunpack.c.l.b16 %v1739_v52  ;;  %v2588_v35 = vrot.slane %v2562_v29, 6  ;;  %v2590_v12 = vrot.slane %v2566_v63, 5 }
 0x156   :  { %v2592_v59 = vrot.slane %v2570_v49, 4  ;;  %v2594_v36 = vrot.slane %v2574_v27, 3  ;;  %v2596_v51 = vrot.slane %v2578_v30, 2  ;;  %v2598_v60 = vrot.slane %v2582_v24, 1 }
 0x157   :  { %v2587_v43 = vsel %vm1836_vm0, %v2586_v54, %v2554_v21  ;;  %v2682_v23 = vunpack.c.l.b16 %v1743_v25  ;;  %v2686_v0 = vunpack.c.l.b16 %v1747_v3  ;;  %v2690_v61 = vunpack.c.l.b16 %v1751_v28 }
 0x158   :  { %v2589_v50 = vsel %vm1839_vm1, %v2588_v35, %v2587_v43  ;;  %v2694_v33 = vunpack.c.l.b16 %v1755_v19  ;;  %v2698_v14 = vunpack.c.l.b16 %v1759_v22  ;;  %v2702_v40 = vunpack.c.l.b16 %v1763_v18 }
 0x159   :  { %v2591_v5 = vsel %vm1842_vm2, %v2590_v12, %v2589_v50  ;;  %v2706_v7 = vunpack.c.l.b16 %v1767_v32  ;;  %v2710_v17 = vrot.slane %v2682_v23, 7  ;;  %v2712_v46 = vrot.slane %v2686_v0, 6 }
 0x15a   :  { %v2593_v47 = vsel %vm1845_vm3, %v2592_v59, %v2591_v5  ;;  %v2714_v39 = vrot.slane %v2690_v61, 5  ;;  %v2716_v11 = vrot.slane %v2694_v33, 4  ;;  %v2718_v20 = vrot.slane %v2698_v14, 3 }
 0x15b   :  { %v2595_v9 = vsel %vm1848_vm4, %v2594_v36, %v2593_v47  ;;  %v2720_v42 = vrot.slane %v2702_v40, 2  ;;  %v2711_v52 = vsel %vm1836_vm0, %v2710_v17, %v2678_v48  ;;  %v2722_v25 = vrot.slane %v2706_v7, 1 }
 0x15c   :  { %v2597_v41 = vsel %vm1851_vm5, %v2596_v51, %v2595_v9  ;;  %v1374_v3 = vrot.slane %v4204_v2, %v3539_v37  ;;  %v2713_v19 = vsel %vm1839_vm1, %v2712_v46, %v2711_v52  ;;  %v1390_v22 = vrot.slane %v4206_v34, %v3539_v37 }
 0x15d   :  { %v2599_v28 = vsel %vm1854_vm6, %v2598_v60, %v2597_v41  ;;  %v1406_v18 = vrot.slane %v4208_v58, %v3539_v37  ;;  %v2715_v21 = vsel %vm1842_vm2, %v2714_v39, %v2713_v19  ;;  %v1422_v62 = vrot.slane %v4211_v45, %v3539_v37 }
 0x15e   :  { %v2642_v32 = vpack.c.b16 %v2599_v28, %v2599_v28  ;;  %v1438_v29 = vrot.slane %v4213_v56, %v3539_v37  ;;  %v2717_v2 = vsel %vm1845_vm3, %v2716_v11, %v2715_v21  ;;  %v1454_v63 = vrot.slane %v4216_v57, %v3539_v37 }
 0x15f   :  { %v1470_v34 = vrot.slane %v4220_v38, %v3539_v37  ;;  %v1486_v58 = vrot.slane %v4224_v1, %v3539_v37  ;;  %v4410_v49 = vpop.f32.mrb[0].mxu1  ;;  %v2719_v27 = vsel %vm1848_vm4, %v2718_v20, %v2717_v2  ;;  %v1525_v30 = vpack.c.bf16 %v1374_v3, %v1374_v3 }
 0x160   :  { %v1529_v45 = vpack.c.bf16 %v1390_v22, %v1390_v22  ;;  %v1533_v24 = vpack.c.bf16 %v1406_v18, %v1406_v18  ;;  %v4413_v54 = vpop.f32.mrb[1].mxu1  ;;  %v2721_v56 = vsel %vm1851_vm5, %v2720_v42, %v2719_v27  ;;  %v1537_v48 = vpack.c.bf16 %v1422_v62, %v1422_v62 }
 0x161   :  { %v1541_v35 = vpack.c.bf16 %v1438_v29, %v1438_v29  ;;  %v1545_v57 = vpack.c.bf16 %v1454_v63, %v1454_v63  ;;  %v4416_v12 = vpop.f32.mrb[2].mxu1  ;;  %v2723_v38 = vsel %vm1854_vm6, %v2722_v25, %v2721_v56  ;;  %v1549_v59 = vpack.c.bf16 %v1470_v34, %v1470_v34 }
 0x162   :  { %v1553_v1 = vpack.c.bf16 %v1486_v58, %v1486_v58  ;;  %v1590_v36 = vrot.slane %v4250_v16, %v3539_v37  ;;  %v4421_v43 = vpop.f32.mrb[3].mxu1  ;;  %v2766_v51 = vpack.c.b16 %v2723_v38, %v2723_v38  ;;  %v1606_v60 = vrot.slane %v4239_v10, %v3539_v37  ;;  %v4447_v38 = vld [vmem:[%s4488_s2] ss:$0 sm:$0xff]  ;;  %s3486_s2 = smov [#allocation7]  }
 0x163   :  { %v1622_v23 = vrot.slane %v4241_v13, %v3539_v37  ;;  %v1638_v50 = vrot.slane %v4252_v55, %v3539_v37  ;;  %v1654_v0 = vrot.slane %v4255_v26, %v3539_v37  ;;  %v1670_v61 = vrot.slane %v4257_v8, %v3539_v37  ;;  %s3241_s13 = sshll.u32 %s3486_s2, 4  ;;  %s3242_s13 = int_to_ptr.vmem [resolvable:$true] %s3241_s13 }
 0x164   :  { %v1686_v16 = vrot.slane %v4260_v53, %v3539_v37  ;;  %v1702_v33 = vrot.slane %v4262_v44, %v3539_v37  ;;  %v2821_v10 = vsel %vm2770_vm7, %v2642_v32, %v2766_v51  ;;  %v1741_v5 = vpack.c.bf16 %v1590_v36, %v1590_v36  ;;  %s3452_s14 = scalar_lea.vmem %s3242_s13, 1024  ;;  %p3457_p3 = scmp.lt.s32.totalorder %s3242_s13, %s3242_s13 }
 0x165   :  { %v1745_v14 = vpack.c.bf16 %v1606_v60, %v1606_v60  ;;  %v1749_v13 = vpack.c.bf16 %v1622_v23, %v1622_v23  ;;  %3155 = vmatmul.mubr.bf16.gmra.mrb[12].mxu0 %v2821_v10  ;;  %v1753_v40 = vpack.c.bf16 %v1638_v50, %v1638_v50  ;;  %v1757_v55 = vpack.c.bf16 %v1654_v0, %v1654_v0  ;;  %p3453_p2 = scmp.ne.s32.totalorder %s3242_s13, %s3452_s14  ;;  %p3458_p4 = scmp.lt.s32.totalorder %s3452_s14, %s3452_s14 }
 0x166   :  { %v1761_v7 = vpack.c.bf16 %v1670_v61, %v1670_v61  ;;  %v1765_v47 = vpack.c.bf16 %v1686_v16, %v1686_v16  ;;  %v1769_v26 = vpack.c.bf16 %v1702_v33, %v1702_v33  ;;  %v2556_v17 = vunpack.c.l.b16 %v1525_v30 }
 0x167   :  { %v2560_v46 = vunpack.c.l.b16 %v1529_v45  ;;  %v2564_v8 = vunpack.c.l.b16 %v1533_v24  ;;  %v2568_v39 = vunpack.c.l.b16 %v1537_v48  ;;  %v2572_v9 = vunpack.c.l.b16 %v1541_v35  ;;  %p3459_p5 = por %p3458_p4, %p3457_p3 }
 0x168   :  { %v2576_v53 = vunpack.c.l.b16 %v1545_v57  ;;  %v2580_v11 = vunpack.c.l.b16 %v1549_v59  ;;  %v2584_v20 = vunpack.c.l.b16 %v1553_v1  ;;  %v2680_v42 = vunpack.c.l.b16 %v1741_v5 }
 0x169   :  { %v2614_v37 = vrot.slane %v2560_v46, 7  ;;  %v2616_v44 = vrot.slane %v2564_v8, 6  ;;  %v2618_v41 = vrot.slane %v2568_v39, 5  ;;  %v2620_v52 = vrot.slane %v2572_v9, 4  ;;  %p3460_p6 = pnand %p3459_p5, %p3453_p2 }
 0x16a   :  { %v2622_v25 = vrot.slane %v2576_v53, 3  ;;  %v2624_v3 = vrot.slane %v2580_v11, 2  ;;  %v2626_v19 = vrot.slane %v2584_v20, 1  ;;  %v2684_v22 = vunpack.c.l.b16 %v1745_v14 }
 0x16b   :  { %v2615_v28 = vsel %vm1836_vm0, %v2614_v37, %v2556_v17  ;;  %v2688_v18 = vunpack.c.l.b16 %v1749_v13  ;;  %v2692_v21 = vunpack.c.l.b16 %v1753_v40  ;;  %v2696_v62 = vunpack.c.l.b16 %v1757_v55 }
 0x16c   :  { %v2617_v32 = vsel %vm1839_vm1, %v2616_v44, %v2615_v28  ;;  %v2700_v29 = vunpack.c.l.b16 %v1761_v7  ;;  %v2704_v63 = vunpack.c.l.b16 %v1765_v47  ;;  %v2708_v34 = vunpack.c.l.b16 %v1769_v26 }
 0x16d   :  { %v2619_v2 = vsel %vm1842_vm2, %v2618_v41, %v2617_v32  ;;  %v2738_v58 = vrot.slane %v2684_v22, 7  ;;  %v2740_v30 = vrot.slane %v2688_v18, 6  ;;  %v2742_v45 = vrot.slane %v2692_v21, 5 }
 0x16e   :  { %v2621_v27 = vsel %vm1845_vm3, %v2620_v52, %v2619_v2  ;;  %v2744_v24 = vrot.slane %v2696_v62, 4  ;;  %v2746_v35 = vrot.slane %v2700_v29, 3  ;;  %v2748_v57 = vrot.slane %v2704_v63, 2 }
 0x16f   :  { %v2623_v56 = vsel %vm1848_vm4, %v2622_v25, %v2621_v27  ;;  %v2739_v48 = vsel %vm1836_vm0, %v2738_v58, %v2680_v42  ;;  %v2750_v36 = vrot.slane %v2708_v34, 1  ;;  %v3305_v51 = vadd.f32 %v4359_v15, %v4356_v4 }
 0x170   :  { %v2625_v59 = vsel %vm1851_vm5, %v2624_v3, %v2623_v56  ;;  %v2741_v1 = vsel %vm1839_vm1, %v2740_v30, %v2739_v48  ;;  %v3345_v50 = vadd.f32 %v4413_v54, %v4410_v49  ;;  %v3308_v0 = vadd.f32 %v4370_v31, %v4362_v6 }
 0x171   :  { %v2627_v60 = vsel %vm1854_vm6, %v2626_v19, %v2625_v59  ;;  %v2743_v23 = vsel %vm1842_vm2, %v2742_v45, %v2741_v1  ;;  %v3133_v16 = vadd.f32 %v3305_v51, %v4447_v38  ;;  %v3348_v33 = vadd.f32 %v4421_v43, %v4416_v12 }
 0x172   :  { %v2745_v61 = vsel %vm1845_vm3, %v2744_v24, %v2743_v23  ;;  %v3136_v4 = vadd.f32 %v3308_v0, %v4447_v38  ;;  %v2644_v15 = vpack.c.b16 %v2627_v60, %v2627_v60 }
 0x173   :  { %v2747_v10 = vsel %vm1848_vm4, %v2746_v35, %v2745_v61  ;;  %v3198_v14 = vadd.f32 %v3345_v50, %v3133_v16 }
 0x174   :  { %v2749_v5 = vsel %vm1851_vm5, %v2748_v57, %v2747_v10  ;;  %v3201_v54 = vadd.f32 %v3348_v33, %v3136_v4 }
 0x175   :  { %v2751_v49 = vsel %vm1854_vm6, %v2750_v36, %v2749_v5  ;;  %3228 = vst [vmem:[#allocation7] sm:$0xff] %v3198_v14 }
 0x176   :  { %v2768_v13 = vpack.c.b16 %v2751_v49, %v2751_v49  ;;  %3229 = vst [vmem:[#allocation7 + $0x8] sm:$0xff] %v3201_v54 }
 0x178   :  { %v2829_v6 = vsel %vm2770_vm7, %v2644_v15, %v2768_v13 }
 0x179   :  { %3220 = vmatmul.mubr.bf16.gmra.mrb[12].mxu1 %v2829_v6 }
 0x19a   :  { %v3309_v31 = vpop.f32.mrb[4].mxu0 }
 0x19b   :  { %v3310_v40 = vpop.f32.mrb[5].mxu0 }
 0x19c   :  { %v3311_v12 = vadd.f32 %v3310_v40, %v3309_v31  ;;  %v3312_v43 = vpop.f32.mrb[6].mxu0 }
 0x19d   :  { %v3313_v55 = vpop.f32.mrb[7].mxu0 }
 0x19e   :  { %v3314_v7 = vadd.f32 %v3313_v55, %v3312_v43  ;;  %v3141_v26 = vadd.f32 %v3311_v12, %v4447_v38 }
 0x1a0   :  { %v3144_v39 = vadd.f32 %v3314_v7, %v4447_v38 }
 0x1ae   :  { %v3349_v47 = vpop.f32.mrb[4].mxu1 }
 0x1af   :  { %v3350_v17 = vpop.f32.mrb[5].mxu1 }
 0x1b0   :  { %v3351_v46 = vadd.f32 %v3350_v17, %v3349_v47  ;;  %v3352_v8 = vpop.f32.mrb[6].mxu1 }
 0x1b1   :  { %v3353_v9 = vpop.f32.mrb[7].mxu1 }
 0x1b2   :  { %v3206_v53 = vadd.f32 %v3351_v46, %v3141_v26  ;;  %v3354_v11 = vadd.f32 %v3353_v9, %v3352_v8 }
 0x1b4   :  { %3230 = vst [vmem:[#allocation7 + $0x10] sm:$0xff] %v3206_v53  ;;  %v3209_v20 = vadd.f32 %v3354_v11, %v3144_v39 }
 0x1b6   :  { %3231 = vst [vmem:[#allocation7 + $0x18] sm:$0xff] %v3209_v20 }
 0x1e9   :  { %v3315_v37 = vpop.f32.mrb[8].mxu0 }
 0x1ea   :  { %v3316_v44 = vpop.f32.mrb[9].mxu0 }
 0x1eb   :  { %v3317_v42 = vadd.f32 %v3316_v44, %v3315_v37  ;;  %v3318_v41 = vpop.f32.mrb[10].mxu0 }
 0x1ec   :  { %v3319_v52 = vpop.f32.mrb[11].mxu0 }
 0x1ed   :  { %v3320_v25 = vadd.f32 %v3319_v52, %v3318_v41  ;;  %v3149_v28 = vadd.f32 %v3317_v42, %v4447_v38 }
 0x1ef   :  { %v3152_v32 = vadd.f32 %v3320_v25, %v4447_v38 }
 0x1fd   :  { %v3355_v3 = vpop.f32.mrb[8].mxu1 }
 0x1fe   :  { %v3356_v19 = vpop.f32.mrb[9].mxu1 }
 0x1ff   :  { %v3357_v22 = vadd.f32 %v3356_v19, %v3355_v3  ;;  %v3358_v18 = vpop.f32.mrb[10].mxu1 }
 0x200   :  { %v3359_v21 = vpop.f32.mrb[11].mxu1 }
 0x201   :  { %v3214_v62 = vadd.f32 %v3357_v22, %v3149_v28  ;;  %v3360_v29 = vadd.f32 %v3359_v21, %v3358_v18 }
 0x203   :  { %3232 = vst [vmem:[#allocation7 + $0x20] sm:$0xff] %v3214_v62  ;;  %v3217_v2 = vadd.f32 %v3360_v29, %v3152_v32 }
 0x205   :  { %3233 = vst [vmem:[#allocation7 + $0x28] sm:$0xff] %v3217_v2 }
 0x238   :  { %v3321_v63 = vpop.f32.mrb[12].mxu0 }
 0x239   :  { %v3322_v34 = vpop.f32.mrb[13].mxu0 }
 0x23a   :  { %v3323_v58 = vadd.f32 %v3322_v34, %v3321_v63  ;;  %v3324_v27 = vpop.f32.mrb[14].mxu0 }
 0x23b   :  { %v3325_v30 = vpop.f32.mrb[15].mxu0 }
 0x23c   :  { %v3326_v45 = vadd.f32 %v3325_v30, %v3324_v27  ;;  %v3157_v56 = vadd.f32 %v3323_v58, %v4447_v38 }
 0x23e   :  { %v3160_v59 = vadd.f32 %v3326_v45, %v4447_v38 }
 0x24c   :  { %v3361_v24 = vpop.f32.mrb[12].mxu1 }
 0x24d   :  { %v3362_v48 = vpop.f32.mrb[13].mxu1 }
 0x24e   :  { %v3363_v35 = vadd.f32 %v3362_v48, %v3361_v24  ;;  %v3364_v57 = vpop.f32.mrb[14].mxu1 }
 0x24f   :  { %v3365_v1 = vpop.f32.mrb[15].mxu1 }
 0x250   :  { %v3222_v36 = vadd.f32 %v3363_v35, %v3157_v56  ;;  %v3366_v51 = vadd.f32 %v3365_v1, %v3364_v57 }
 0x252   :  { %3234 = vst [vmem:[#allocation7 + $0x30] sm:$0xff] %v3222_v36  ;;  %v3225_v60 = vadd.f32 %v3366_v51, %v3160_v59 }
 0x254   :  { %3235 = vst [vmem:[#allocation7 + $0x38] sm:$0xff] %v3225_v60 }
 0x255   :  { %3463 = shalt.err (!%p3460_p6)
}
 0x256   :  { %s3464_s17 = scalar_lea.hbm %s4489_s3, 1024 }
 0x257   :  { %p3465_p7 = scmp.ne.s32.totalorder %s4489_s3, %s3464_s17  ;;  %p3468_p8 = scmp.lt.u32.totalorder %s3464_s17, %s4489_s3 }
 0x259   :  { %p3470_p9 = pnand %p3468_p8, %p3465_p7 }
 0x25b   :  { %3473 = shalt.err (!%p3470_p9)
}
 0x25c   :  { %s3487_s22 = smov 128   ;;  %s3488_s23 = smov 8  }
 0x25d   :  { %3247 = dma.vmem_to_hbm [thread:$0]  %s3242_s13, 1024, %s4489_s3, [#allocation4], %s3487_s22, %s3487_s22, %s3488_s23  }
 0x25e   :  { %3478 = dma.done.wait [#allocation4], 1024  }
 0x25f   :  { %3479 = vsyncadd [#allocation4], 4294966272 }
 0x260   :  { %3251 = vsyncpa [#allocation3], 1 }
 0x261   :  { %3252 = vsyncpa [#allocation6], 1 }
 0x262   :  { %3253 = vsyncpa [#allocation4], 1 }

</bundles_post_ra>
